<compile_context>
chip_gen: v5e
topology: v5e:2x2
jax: 0.10.0
libtpu: 0.0.40
codegen_flags: <defaults>
</compile_context>

<pallas_src>
import jax
import jax.numpy as jnp
from jax.experimental import pallas as pl
from jax.experimental.pallas import tpu as pltpu

EPS = 1e-5


def bottleneck_kernel(x_ref,
                      w1_ref, s1_ref, b1_ref,
                      w2_ref, s2_ref, b2_ref,
                      w3_ref, s3_ref, b3_ref,
                      o_ref,
                      y1pad_ref):
    """Grid = (batch, H-row block).

    x_ref    : (1, H, W, Cin)  bf16  NHWC input, resident across row blocks
    w1_ref   : (Cin, P)        bf16  1x1 conv
    w2_ref   : (9*P, P)        bf16  3x3 conv, rows ordered (kh, kw, cin)
    w3_ref   : (P, Cin)        bf16  1x1 conv
    s*/b*    : (1, C)          f32   folded BN scale / bias
    o_ref    : (1, Hb, W, Cin) bf16  output row block
    y1pad_ref: (H*W + 2*T, P)  f32   y1 with T zero rows above and below
    """
    H, W, Cin = x_ref.shape[1], x_ref.shape[2], x_ref.shape[3]
    P = w1_ref.shape[1]
    HW = H * W
    Hb = o_ref.shape[1]                       # rows per grid step
    HbW = Hb * W
    T = (y1pad_ref.shape[0] - HW) // 2        # per-side zero border (>= W + 1)
    WIN = HbW + 2 * T                         # window rows needed per block

    h = pl.program_id(1)

    # ---- conv1 (1x1) -> bn1 -> relu for the whole image, once per image ----
    @pl.when(h == 0)
    def _():
        x2 = x_ref[0].reshape(HW, Cin)                       # bf16 (HW, Cin)
        y1 = jnp.dot(x2, w1_ref[...], preferred_element_type=jnp.float32)
        y1 = jnp.maximum(y1 * s1_ref[...] + b1_ref[...], 0.0)
        zero = jnp.zeros((T, P), jnp.float32)
        y1pad_ref[0:T, :] = zero                             # border only
        y1pad_ref[T + HW:T + HW + T, :] = zero
        y1pad_ref[T:T + HW, :] = y1

    # ---- conv2 (3x3, pad=1, stride=1) for this row block --------------------
    # Border masks hoisted out of the tap loop (w coordinate of each row of
    # the flattened block; r0 is a multiple of W so local index works).
    wcol = jax.lax.broadcasted_iota(jnp.int32, (HbW, P), 0) % W
    mask_l = wcol >= 1
    mask_r = wcol <= W - 2

    # One aligned dynamic window read; all +-1 tap shifts are static slices.
    r0 = pl.multiple_of(h * HbW, HbW)
    win = y1pad_ref[pl.ds(r0, WIN), :]                       # (WIN, P) f32

    y2 = jnp.zeros((HbW, P), jnp.float32)
    t = 0
    for dy in (-1, 0, 1):                    # kh-major ...
        for dx in (-1, 0, 1):                # ... kw inner: matches w2 rows
            s0 = T + dy * W + dx
            tap = win[s0:s0 + HbW, :].astype(jnp.bfloat16)   # (HbW, P)
            if dx == -1:
                tap = jnp.where(mask_l, tap, 0)
            elif dx == 1:
                tap = jnp.where(mask_r, tap, 0)
            y2 = y2 + jnp.dot(tap, w2_ref[t * P:(t + 1) * P, :],
                              preferred_element_type=jnp.float32)
            t += 1
    y2 = jnp.maximum(y2 * s2_ref[...] + b2_ref[...], 0.0)    # (HbW, P) f32

    # ---- conv3 (1x1) -> bn3 -> +identity -> relu ----------------------------
    y3 = jnp.dot(y2.astype(jnp.bfloat16), w3_ref[...],
                 preferred_element_type=jnp.float32)
    y3 = y3 * s3_ref[...] + b3_ref[...]
    # Re-read the residual rows at the point of use (no long-lived x value).
    xres = x_ref[0, pl.ds(h * Hb, Hb), :, :].reshape(HbW, Cin)
    out = jnp.maximum(y3 + xres.astype(jnp.float32), 0.0)    # (HbW, Cin) f32
    o_ref[0] = out.reshape(Hb, W, Cin).astype(o_ref.dtype)


def bottleneck_pallas(x_nhwc, w1, s1, b1, w2, s2, b2, w3, s3, b3, *,
                      row_block=4):
    """x_nhwc: (N, H, W, Cin) float.  Folded weights: w1 (Cin, P),
    w2 (9P, P) rows ordered (kh, kw, cin), w3 (P, Cin); s*/b* are (1, C) f32.

    Implements the Bottleneck defaults only: stride=1, downsample=None
    (identity must match the conv3 output channel count).  Returns bf16 NHWC.
    """
    N, H, W, Cin = x_nhwc.shape
    P = w1.shape[1]
    # stride=1 / downsample=None Bottleneck only.
    assert w1.shape == (Cin, P), (w1.shape, (Cin, P))
    assert w2.shape == (9 * P, P), (w2.shape, (9 * P, P))
    assert w3.shape == (P, Cin), (w3.shape, (P, Cin))
    assert H % row_block == 0, "row_block must divide H"
    HbW = row_block * W
    assert HbW % 8 == 0, "row_block * W must be sublane aligned"
    HW = H * W
    T = ((W + 1 + 7) // 8) * 8              # >= W + 1, sublane aligned

    # bf16 activation I/O + bf16 MXU operands (f32 accumulation in-kernel).
    xb = x_nhwc.astype(jnp.bfloat16)
    w1b = w1.astype(jnp.bfloat16)
    w2b = w2.astype(jnp.bfloat16)
    w3b = w3.astype(jnp.bfloat16)
    s1, b1, s2, b2, s3, b3 = (a.astype(jnp.float32)
                              for a in (s1, b1, s2, b2, s3, b3))

    def const_spec(arr):
        return pl.BlockSpec(arr.shape, lambda n, h: (0, 0))

    flops = 2 * N * HW * (Cin * P + 9 * P * P + P * Cin)
    bytes_accessed = (
        2 * N * HW * Cin * 2                                    # bf16 act in+out
        + (w1b.size + w2b.size + w3b.size) * 2                  # bf16 weights
        + (s1.size + b1.size + s2.size + b2.size
           + s3.size + b3.size) * 4                             # f32 BN params
        + 2 * N * HW * P * 4)                                   # y1 scratch r/w

    return pl.pallas_call(
        bottleneck_kernel,
        out_shape=jax.ShapeDtypeStruct((N, H, W, Cin), jnp.bfloat16),
        grid=(N, H // row_block),
        in_specs=[
            # x stays resident across the row-block axis (DMA once per image,
            # prefetched while the previous image's row blocks compute).
            pl.BlockSpec((1, H, W, Cin), lambda n, h: (n, 0, 0, 0)),
            const_spec(w1b), const_spec(s1), const_spec(b1),
            const_spec(w2b), const_spec(s2), const_spec(b2),
            const_spec(w3b), const_spec(s3), const_spec(b3),
        ],
        out_specs=pl.BlockSpec((1, row_block, W, Cin),
                               lambda n, h: (n, h, 0, 0)),
        scratch_shapes=[
            pltpu.VMEM((HW + 2 * T, P), jnp.float32),   # zero-bordered y1
        ],
        compiler_params=pltpu.CompilerParams(
            # Batch axis sharded across TensorCores (v7x has 2 TCs / megacore);
            # row-block axis iterates sequentially per core.
            # TODO(synk): confirm in an xprof trace that "parallel" actually
            # shards the batch axis across v7x's two TCs; switch to
            # pltpu.CORE_PARALLEL / pl.core_map if it does not.
            dimension_semantics=("parallel", "arbitrary"),
            vmem_limit_bytes=32 * 1024 * 1024),        # stays within v7x 64 MiB
        cost_estimate=pl.CostEstimate(
            flops=flops, transcendentals=0, bytes_accessed=bytes_accessed),
    )(xb, w1b, s1, b1, w2b, s2, b2, w3b, s3, b3)


# --------------------------- pure-JAX reference ---------------------------
def ref_bottleneck(x_nhwc, conv1_w, conv2_w, conv3_w, bns):
    def conv(x, w_oihw, padding):
        w_hwio = jnp.transpose(w_oihw, (2, 3, 1, 0))
        return jax.lax.conv_general_dilated(
            x, w_hwio, (1, 1), padding,
            dimension_numbers=("NHWC", "HWIO", "NHWC"))

    def bn(x, g, b, m, v):
        return (x - m) / jnp.sqrt(v + EPS) * g + b

    (g1, be1, m1, v1), (g2, be2, m2, v2), (g3, be3, m3, v3) = bns
    out = jax.nn.relu(bn(conv(x_nhwc, conv1_w, "VALID"), g1, be1, m1, v1))
    out = jax.nn.relu(bn(conv(out, conv2_w, ((1, 1), (1, 1))), g2, be2, m2, v2))
    out = bn(conv(out, conv3_w, "VALID"), g3, be3, m3, v3)
    return jax.nn.relu(out + x_nhwc)


if __name__ == "__main__":
    # inplanes = planes * expansion = 128: the identity path is valid with
    # downsample=None AND the NHWC channel minor dim is lane-dense (128).
    N, planes, expansion, H, W = 2, 32, 4, 16, 16
    inplanes = planes * expansion                     # 128

    key = jax.random.PRNGKey(0)
    ks = jax.random.split(key, 16)

    # PyTorch-layout conv weights (O, I, kh, kw), deterministic init.
    conv1_w = jax.random.normal(ks[0], (planes, inplanes, 1, 1), jnp.float32) * 0.1
    conv2_w = jax.random.normal(ks[1], (planes, planes, 3, 3), jnp.float32) * 0.1
    conv3_w = jax.random.normal(ks[2], (planes * expansion, planes, 1, 1),
                                jnp.float32) * 0.1

    def bn_params(kg, kb, km, kv, c):
        gamma = jax.random.normal(kg, (c,), jnp.float32) * 0.1 + 1.0
        beta = jax.random.normal(kb, (c,), jnp.float32) * 0.1
        mean = jax.random.normal(km, (c,), jnp.float32) * 0.1
        var = jax.random.uniform(kv, (c,), jnp.float32, 0.5, 1.5)
        return gamma, beta, mean, var

    bn1 = bn_params(ks[3], ks[4], ks[5], ks[6], planes)
    bn2 = bn_params(ks[7], ks[8], ks[9], ks[10], planes)
    bn3 = bn_params(ks[11], ks[12], ks[13], ks[14], planes * expansion)

    # Input (PyTorch would be NCHW (2, 128, 16, 16)); kernel uses NHWC.
    x_nhwc = jax.random.normal(ks[15], (N, H, W, inplanes), jnp.float32)

    # ---- fold parameters into kernel-friendly layouts ----------------------
    def fold(bn):
        g, b, m, v = bn
        scale = g / jnp.sqrt(v + EPS)
        bias = b - m * scale
        return scale[None, :], bias[None, :]          # (1, C)

    s1, b1 = fold(bn1)
    s2, b2 = fold(bn2)
    s3, b3 = fold(bn3)

    w1 = conv1_w[:, :, 0, 0].T                                    # (Cin, P)
    w2 = jnp.transpose(conv2_w, (2, 3, 1, 0)).reshape(9 * planes, planes)
    w3 = conv3_w[:, :, 0, 0].T                                    # (P, Cin)

    out = bottleneck_pallas(x_nhwc, w1, s1, b1, w2, s2, b2, w3, s3, b3,
                            row_block=4)
    out = jax.block_until_ready(out)

    ref = ref_bottleneck(x_nhwc, conv1_w, conv2_w, conv3_w, (bn1, bn2, bn3))
    assert out.shape == (N, H, W, inplanes)
    assert out.dtype == jnp.bfloat16

    # bf16 MXU operands + bf16 activation I/O (f32 accumulation / BN / ReLU /
    # residual) vs an all-f32 reference: expect ~1e-1-level worst-case
    # absolute error at these magnitudes.
    err = jnp.abs(out.astype(jnp.float32) - ref)
    max_err = float(jnp.max(err))
    mean_err = float(jnp.mean(err))
    assert max_err < 0.3 and mean_err < 0.05, (max_err, mean_err)

    print("KERNEL_OK")
</pallas_src>

<mosaic_0001>
module attributes {stable_mosaic.version = 11 : i64} {
  func.func @bottleneck_kernel(%arg0: i32, %arg1: i32, %arg2: memref<1x16x16x128xbf16, #tpu.memory_space<vmem>>, %arg3: memref<128x32xbf16, #tpu.memory_space<vmem>>, %arg4: memref<1x32xf32, #tpu.memory_space<vmem>>, %arg5: memref<1x32xf32, #tpu.memory_space<vmem>>, %arg6: memref<288x32xbf16, #tpu.memory_space<vmem>>, %arg7: memref<1x32xf32, #tpu.memory_space<vmem>>, %arg8: memref<1x32xf32, #tpu.memory_space<vmem>>, %arg9: memref<32x128xbf16, #tpu.memory_space<vmem>>, %arg10: memref<1x128xf32, #tpu.memory_space<vmem>>, %arg11: memref<1x128xf32, #tpu.memory_space<vmem>>, %arg12: memref<1x4x16x128xbf16, #tpu.memory_space<vmem>>, %arg13: memref<304x32xf32, #tpu.memory_space<vmem>>) attributes {dimension_semantics = [#tpu.dimension_semantics<parallel>, #tpu.dimension_semantics<arbitrary>], iteration_bounds = array<i64: 2, 4>, scalar_prefetch = 0 : i64, scratch_operands = 1 : i64, tpu.core_type = #tpu.core_type<tc>, window_params = [{transform_indices = @transform_0, window_bounds = array<i64: 1, 16, 16, 128>}, {pipeline_mode = #tpu.pipeline_mode<synchronous>, transform_indices = @transform_1, window_bounds = array<i64: 128, 32>}, {pipeline_mode = #tpu.pipeline_mode<synchronous>, transform_indices = @transform_2, window_bounds = array<i64: 1, 32>}, {pipeline_mode = #tpu.pipeline_mode<synchronous>, transform_indices = @transform_3, window_bounds = array<i64: 1, 32>}, {pipeline_mode = #tpu.pipeline_mode<synchronous>, transform_indices = @transform_4, window_bounds = array<i64: 288, 32>}, {pipeline_mode = #tpu.pipeline_mode<synchronous>, transform_indices = @transform_5, window_bounds = array<i64: 1, 32>}, {pipeline_mode = #tpu.pipeline_mode<synchronous>, transform_indices = @transform_6, window_bounds = array<i64: 1, 32>}, {pipeline_mode = #tpu.pipeline_mode<synchronous>, transform_indices = @transform_7, window_bounds = array<i64: 32, 128>}, {pipeline_mode = #tpu.pipeline_mode<synchronous>, transform_indices = @transform_8, window_bounds = array<i64: 1, 128>}, {pipeline_mode = #tpu.pipeline_mode<synchronous>, transform_indices = @transform_9, window_bounds = array<i64: 1, 128>}, {transform_indices = @transform_10, window_bounds = array<i64: 1, 4, 16, 128>}]} {
    %c0_i32 = arith.constant 0 : i32
    %0 = arith.cmpi eq, %arg1, %c0_i32 : i32
    %1 = arith.extui %0 : i1 to i32
    %c0_i32_0 = arith.constant 0 : i32
    %2 = arith.cmpi ne, %1, %c0_i32_0 : i32
    scf.if %2 {
      %c0_51 = arith.constant 0 : index
      %c0_52 = arith.constant 0 : index
      %c0_53 = arith.constant 0 : index
      %c0_54 = arith.constant 0 : index
      %123 = vector.load %arg2[%c0_51, %c0_52, %c0_53, %c0_54] : memref<1x16x16x128xbf16, #tpu.memory_space<vmem>>, vector<1x16x16x128xbf16>
      %124 = vector.shape_cast %123 : vector<1x16x16x128xbf16> to vector<16x16x128xbf16>
      %125 = vector.shape_cast %124 : vector<16x16x128xbf16> to vector<256x128xbf16>
      %c0_55 = arith.constant 0 : index
      %c0_56 = arith.constant 0 : index
      %126 = vector.load %arg3[%c0_55, %c0_56] : memref<128x32xbf16, #tpu.memory_space<vmem>>, vector<128x32xbf16>
      %cst_57 = arith.constant dense<0.000000e+00> : vector<256x32xf32>
      %127 = tpu.matmul %125, %126, %cst_57 {dimension_numbers = #tpu.dot_dimension_numbers<[1], [0], [0], [1], [0, 0, 1, 1], [], []>} : vector<256x128xbf16>, vector<128x32xbf16>, vector<256x32xf32> -> vector<256x32xf32>
      %c0_58 = arith.constant 0 : index
      %c0_59 = arith.constant 0 : index
      %128 = vector.load %arg4[%c0_58, %c0_59] : memref<1x32xf32, #tpu.memory_space<vmem>>, vector<1x32xf32>
      %129 = vector.broadcast %128 : vector<1x32xf32> to vector<256x32xf32>
      %130 = arith.mulf %127, %129 : vector<256x32xf32>
      %c0_60 = arith.constant 0 : index
      %c0_61 = arith.constant 0 : index
      %131 = vector.load %arg5[%c0_60, %c0_61] : memref<1x32xf32, #tpu.memory_space<vmem>>, vector<1x32xf32>
      %132 = vector.broadcast %131 : vector<1x32xf32> to vector<256x32xf32>
      %133 = arith.addf %130, %132 : vector<256x32xf32>
      %cst_62 = arith.constant 0.000000e+00 : f32
      %134 = vector.broadcast %cst_62 : f32 to vector<256x32xf32>
      %135 = arith.maximumf %133, %134 : vector<256x32xf32>
      %cst_63 = arith.constant 0.000000e+00 : f32
      %136 = vector.broadcast %cst_63 : f32 to vector<24x32xf32>
      %c0_64 = arith.constant 0 : index
      %c0_65 = arith.constant 0 : index
      %137 = vector.load %arg13[%c0_64, %c0_65] : memref<304x32xf32, #tpu.memory_space<vmem>>, vector<24x32xf32>
      tpu.vector_store %arg13[%c0_64, %c0_65], %136 {strides = array<i32>} : memref<304x32xf32, #tpu.memory_space<vmem>>, vector<24x32xf32>,
      %c280 = arith.constant 280 : index
      %c0_66 = arith.constant 0 : index
      %138 = vector.load %arg13[%c280, %c0_66] : memref<304x32xf32, #tpu.memory_space<vmem>>, vector<24x32xf32>
      tpu.vector_store %arg13[%c280, %c0_66], %136 {strides = array<i32>} : memref<304x32xf32, #tpu.memory_space<vmem>>, vector<24x32xf32>,
      %c24 = arith.constant 24 : index
      %c0_67 = arith.constant 0 : index
      %139 = vector.load %arg13[%c24, %c0_67] : memref<304x32xf32, #tpu.memory_space<vmem>>, vector<256x32xf32>
      tpu.vector_store %arg13[%c24, %c0_67], %135 {strides = array<i32>} : memref<304x32xf32, #tpu.memory_space<vmem>>, vector<256x32xf32>,
    } else {
    }
    %3 = tpu.iota {dimensions = array<i32: 0>} : vector<64x32xi32>
    %c16_i32 = arith.constant 16 : i32
    %c0_i32_1 = arith.constant 0 : i32
    %4 = arith.cmpi eq, %c16_i32, %c0_i32_1 : i32
    %c1_i32 = arith.constant 1 : i32
    %5 = arith.select %4, %c1_i32, %c16_i32 : i32
    %6 = vector.broadcast %5 : i32 to vector<64x32xi32>
    %7 = arith.remsi %3, %6 : vector<64x32xi32>
    %c0_i32_2 = arith.constant 0 : i32
    %8 = vector.broadcast %c0_i32_2 : i32 to vector<64x32xi32>
    %9 = arith.cmpi ne, %7, %8 : vector<64x32xi32>
    %c0_i32_3 = arith.constant 0 : i32
    %10 = vector.broadcast %c0_i32_3 : i32 to vector<64x32xi32>
    %11 = arith.cmpi slt, %7, %10 : vector<64x32xi32>
    %c0_i32_4 = arith.constant 0 : i32
    %12 = arith.cmpi slt, %5, %c0_i32_4 : i32
    %13 = vector.broadcast %12 : i1 to vector<64x32xi1>
    %14 = vector.broadcast %13 : vector<64x32xi1> to vector<64x32xi1>
    %15 = arith.xori %11, %14 : vector<64x32xi1>
    %16 = arith.andi %15, %9 : vector<64x32xi1>
    %17 = vector.broadcast %5 : i32 to vector<64x32xi32>
    %18 = arith.addi %7, %17 : vector<64x32xi32>
    %19 = arith.select %16, %18, %7 : vector<64x32xi1>, vector<64x32xi32>
    %c1_i32_5 = arith.constant 1 : i32
    %20 = vector.broadcast %c1_i32_5 : i32 to vector<64x32xi32>
    %21 = arith.cmpi sge, %19, %20 : vector<64x32xi32>
    %c14_i32 = arith.constant 14 : i32
    %22 = vector.broadcast %c14_i32 : i32 to vector<64x32xi32>
    %23 = arith.cmpi sle, %19, %22 : vector<64x32xi32>
    %c64_i32 = arith.constant 64 : i32
    %24 = arith.muli %arg1, %c64_i32 : i32
    %25 = tpu.assume_multiple %24, 64 : i32
    %26 = arith.index_cast %25 : i32 to index
    %c0 = arith.constant 0 : index
    %27 = vector.load %arg13[%26, %c0] : memref<304x32xf32, #tpu.memory_space<vmem>>, vector<112x32xf32>
    %cst = arith.constant 0.000000e+00 : f32
    %28 = vector.broadcast %cst : f32 to vector<64x32xf32>
    %29 = vector.extract_strided_slice %27 {offsets = [7, 0], sizes = [64, 32], strides = [1, 1]} : vector<112x32xf32> to vector<64x32xf32>
    %30 = arith.truncf %29 : vector<64x32xf32> to vector<64x32xbf16>
    %c0_i32_6 = arith.constant 0 : i32
    %31 = arith.sitofp %c0_i32_6 : i32 to bf16
    %32 = vector.broadcast %31 : bf16 to vector<64x32xbf16>
    %33 = arith.select %21, %30, %32 : vector<64x32xi1>, vector<64x32xbf16>
    %c0_7 = arith.constant 0 : index
    %c0_8 = arith.constant 0 : index
    %34 = vector.load %arg6[%c0_7, %c0_8] : memref<288x32xbf16, #tpu.memory_space<vmem>>, vector<32x32xbf16>
    %cst_9 = arith.constant dense<0.000000e+00> : vector<64x32xf32>
    %35 = tpu.matmul %33, %34, %cst_9 {dimension_numbers = #tpu.dot_dimension_numbers<[1], [0], [0], [1], [0, 0, 1, 1], [], []>} : vector<64x32xbf16>, vector<32x32xbf16>, vector<64x32xf32> -> vector<64x32xf32>
    %36 = arith.addf %28, %35 : vector<64x32xf32>
    %37 = vector.extract_strided_slice %27 {offsets = [8, 0], sizes = [64, 32], strides = [1, 1]} : vector<112x32xf32> to vector<64x32xf32>
    %38 = arith.truncf %37 : vector<64x32xf32> to vector<64x32xbf16>
    %c32 = arith.constant 32 : index
    %c0_10 = arith.constant 0 : index
    %39 = vector.load %arg6[%c32, %c0_10] : memref<288x32xbf16, #tpu.memory_space<vmem>>, vector<32x32xbf16>
    %cst_11 = arith.constant dense<0.000000e+00> : vector<64x32xf32>
    %40 = tpu.matmul %38, %39, %cst_11 {dimension_numbers = #tpu.dot_dimension_numbers<[1], [0], [0], [1], [0, 0, 1, 1], [], []>} : vector<64x32xbf16>, vector<32x32xbf16>, vector<64x32xf32> -> vector<64x32xf32>
    %41 = arith.addf %36, %40 : vector<64x32xf32>
    %42 = vector.extract_strided_slice %27 {offsets = [9, 0], sizes = [64, 32], strides = [1, 1]} : vector<112x32xf32> to vector<64x32xf32>
    %43 = arith.truncf %42 : vector<64x32xf32> to vector<64x32xbf16>
    %c0_i32_12 = arith.constant 0 : i32
    %44 = arith.sitofp %c0_i32_12 : i32 to bf16
    %45 = vector.broadcast %44 : bf16 to vector<64x32xbf16>
    %46 = arith.select %23, %43, %45 : vector<64x32xi1>, vector<64x32xbf16>
    %c64 = arith.constant 64 : index
    %c0_13 = arith.constant 0 : index
    %47 = vector.load %arg6[%c64, %c0_13] : memref<288x32xbf16, #tpu.memory_space<vmem>>, vector<32x32xbf16>
    %cst_14 = arith.constant dense<0.000000e+00> : vector<64x32xf32>
    %48 = tpu.matmul %46, %47, %cst_14 {dimension_numbers = #tpu.dot_dimension_numbers<[1], [0], [0], [1], [0, 0, 1, 1], [], []>} : vector<64x32xbf16>, vector<32x32xbf16>, vector<64x32xf32> -> vector<64x32xf32>
    %49 = arith.addf %41, %48 : vector<64x32xf32>
    %50 = vector.extract_strided_slice %27 {offsets = [23, 0], sizes = [64, 32], strides = [1, 1]} : vector<112x32xf32> to vector<64x32xf32>
    %51 = arith.truncf %50 : vector<64x32xf32> to vector<64x32xbf16>
    %c0_i32_15 = arith.constant 0 : i32
    %52 = arith.sitofp %c0_i32_15 : i32 to bf16
    %53 = vector.broadcast %52 : bf16 to vector<64x32xbf16>
    %54 = arith.select %21, %51, %53 : vector<64x32xi1>, vector<64x32xbf16>
    %c96 = arith.constant 96 : index
    %c0_16 = arith.constant 0 : index
    %55 = vector.load %arg6[%c96, %c0_16] : memref<288x32xbf16, #tpu.memory_space<vmem>>, vector<32x32xbf16>
    %cst_17 = arith.constant dense<0.000000e+00> : vector<64x32xf32>
    %56 = tpu.matmul %54, %55, %cst_17 {dimension_numbers = #tpu.dot_dimension_numbers<[1], [0], [0], [1], [0, 0, 1, 1], [], []>} : vector<64x32xbf16>, vector<32x32xbf16>, vector<64x32xf32> -> vector<64x32xf32>
    %57 = arith.addf %49, %56 : vector<64x32xf32>
    %58 = vector.extract_strided_slice %27 {offsets = [24, 0], sizes = [64, 32], strides = [1, 1]} : vector<112x32xf32> to vector<64x32xf32>
    %59 = arith.truncf %58 : vector<64x32xf32> to vector<64x32xbf16>
    %c128 = arith.constant 128 : index
    %c0_18 = arith.constant 0 : index
    %60 = vector.load %arg6[%c128, %c0_18] : memref<288x32xbf16, #tpu.memory_space<vmem>>, vector<32x32xbf16>
    %cst_19 = arith.constant dense<0.000000e+00> : vector<64x32xf32>
    %61 = tpu.matmul %59, %60, %cst_19 {dimension_numbers = #tpu.dot_dimension_numbers<[1], [0], [0], [1], [0, 0, 1, 1], [], []>} : vector<64x32xbf16>, vector<32x32xbf16>, vector<64x32xf32> -> vector<64x32xf32>
    %62 = arith.addf %57, %61 : vector<64x32xf32>
    %63 = vector.extract_strided_slice %27 {offsets = [25, 0], sizes = [64, 32], strides = [1, 1]} : vector<112x32xf32> to vector<64x32xf32>
    %64 = arith.truncf %63 : vector<64x32xf32> to vector<64x32xbf16>
    %c0_i32_20 = arith.constant 0 : i32
    %65 = arith.sitofp %c0_i32_20 : i32 to bf16
    %66 = vector.broadcast %65 : bf16 to vector<64x32xbf16>
    %67 = arith.select %23, %64, %66 : vector<64x32xi1>, vector<64x32xbf16>
    %c160 = arith.constant 160 : index
    %c0_21 = arith.constant 0 : index
    %68 = vector.load %arg6[%c160, %c0_21] : memref<288x32xbf16, #tpu.memory_space<vmem>>, vector<32x32xbf16>
    %cst_22 = arith.constant dense<0.000000e+00> : vector<64x32xf32>
    %69 = tpu.matmul %67, %68, %cst_22 {dimension_numbers = #tpu.dot_dimension_numbers<[1], [0], [0], [1], [0, 0, 1, 1], [], []>} : vector<64x32xbf16>, vector<32x32xbf16>, vector<64x32xf32> -> vector<64x32xf32>
    %70 = arith.addf %62, %69 : vector<64x32xf32>
    %71 = vector.extract_strided_slice %27 {offsets = [39, 0], sizes = [64, 32], strides = [1, 1]} : vector<112x32xf32> to vector<64x32xf32>
    %72 = arith.truncf %71 : vector<64x32xf32> to vector<64x32xbf16>
    %c0_i32_23 = arith.constant 0 : i32
    %73 = arith.sitofp %c0_i32_23 : i32 to bf16
    %74 = vector.broadcast %73 : bf16 to vector<64x32xbf16>
    %75 = arith.select %21, %72, %74 : vector<64x32xi1>, vector<64x32xbf16>
    %c192 = arith.constant 192 : index
    %c0_24 = arith.constant 0 : index
    %76 = vector.load %arg6[%c192, %c0_24] : memref<288x32xbf16, #tpu.memory_space<vmem>>, vector<32x32xbf16>
    %cst_25 = arith.constant dense<0.000000e+00> : vector<64x32xf32>
    %77 = tpu.matmul %75, %76, %cst_25 {dimension_numbers = #tpu.dot_dimension_numbers<[1], [0], [0], [1], [0, 0, 1, 1], [], []>} : vector<64x32xbf16>, vector<32x32xbf16>, vector<64x32xf32> -> vector<64x32xf32>
    %78 = arith.addf %70, %77 : vector<64x32xf32>
    %79 = vector.extract_strided_slice %27 {offsets = [40, 0], sizes = [64, 32], strides = [1, 1]} : vector<112x32xf32> to vector<64x32xf32>
    %80 = arith.truncf %79 : vector<64x32xf32> to vector<64x32xbf16>
    %c224 = arith.constant 224 : index
    %c0_26 = arith.constant 0 : index
    %81 = vector.load %arg6[%c224, %c0_26] : memref<288x32xbf16, #tpu.memory_space<vmem>>, vector<32x32xbf16>
    %cst_27 = arith.constant dense<0.000000e+00> : vector<64x32xf32>
    %82 = tpu.matmul %80, %81, %cst_27 {dimension_numbers = #tpu.dot_dimension_numbers<[1], [0], [0], [1], [0, 0, 1, 1], [], []>} : vector<64x32xbf16>, vector<32x32xbf16>, vector<64x32xf32> -> vector<64x32xf32>
    %83 = arith.addf %78, %82 : vector<64x32xf32>
    %84 = vector.extract_strided_slice %27 {offsets = [41, 0], sizes = [64, 32], strides = [1, 1]} : vector<112x32xf32> to vector<64x32xf32>
    %85 = arith.truncf %84 : vector<64x32xf32> to vector<64x32xbf16>
    %c0_i32_28 = arith.constant 0 : i32
    %86 = arith.sitofp %c0_i32_28 : i32 to bf16
    %87 = vector.broadcast %86 : bf16 to vector<64x32xbf16>
    %88 = arith.select %23, %85, %87 : vector<64x32xi1>, vector<64x32xbf16>
    %c256 = arith.constant 256 : index
    %c0_29 = arith.constant 0 : index
    %89 = vector.load %arg6[%c256, %c0_29] : memref<288x32xbf16, #tpu.memory_space<vmem>>, vector<32x32xbf16>
    %cst_30 = arith.constant dense<0.000000e+00> : vector<64x32xf32>
    %90 = tpu.matmul %88, %89, %cst_30 {dimension_numbers = #tpu.dot_dimension_numbers<[1], [0], [0], [1], [0, 0, 1, 1], [], []>} : vector<64x32xbf16>, vector<32x32xbf16>, vector<64x32xf32> -> vector<64x32xf32>
    %91 = arith.addf %83, %90 : vector<64x32xf32>
    %c0_31 = arith.constant 0 : index
    %c0_32 = arith.constant 0 : index
    %92 = vector.load %arg7[%c0_31, %c0_32] : memref<1x32xf32, #tpu.memory_space<vmem>>, vector<1x32xf32>
    %93 = vector.broadcast %92 : vector<1x32xf32> to vector<64x32xf32>
    %94 = arith.mulf %91, %93 : vector<64x32xf32>
    %c0_33 = arith.constant 0 : index
    %c0_34 = arith.constant 0 : index
    %95 = vector.load %arg8[%c0_33, %c0_34] : memref<1x32xf32, #tpu.memory_space<vmem>>, vector<1x32xf32>
    %96 = vector.broadcast %95 : vector<1x32xf32> to vector<64x32xf32>
    %97 = arith.addf %94, %96 : vector<64x32xf32>
    %cst_35 = arith.constant 0.000000e+00 : f32
    %98 = vector.broadcast %cst_35 : f32 to vector<64x32xf32>
    %99 = arith.maximumf %97, %98 : vector<64x32xf32>
    %100 = arith.truncf %99 : vector<64x32xf32> to vector<64x32xbf16>
    %c0_36 = arith.constant 0 : index
    %c0_37 = arith.constant 0 : index
    %101 = vector.load %arg9[%c0_36, %c0_37] : memref<32x128xbf16, #tpu.memory_space<vmem>>, vector<32x128xbf16>
    %cst_38 = arith.constant dense<0.000000e+00> : vector<64x128xf32>
    %102 = tpu.matmul %100, %101, %cst_38 {dimension_numbers = #tpu.dot_dimension_numbers<[1], [0], [0], [1], [0, 0, 1, 1], [], []>} : vector<64x32xbf16>, vector<32x128xbf16>, vector<64x128xf32> -> vector<64x128xf32>
    %c0_39 = arith.constant 0 : index
    %c0_40 = arith.constant 0 : index
    %103 = vector.load %arg10[%c0_39, %c0_40] : memref<1x128xf32, #tpu.memory_space<vmem>>, vector<1x128xf32>
    %104 = vector.broadcast %103 : vector<1x128xf32> to vector<64x128xf32>
    %105 = arith.mulf %102, %104 : vector<64x128xf32>
    %c0_41 = arith.constant 0 : index
    %c0_42 = arith.constant 0 : index
    %106 = vector.load %arg11[%c0_41, %c0_42] : memref<1x128xf32, #tpu.memory_space<vmem>>, vector<1x128xf32>
    %107 = vector.broadcast %106 : vector<1x128xf32> to vector<64x128xf32>
    %108 = arith.addf %105, %107 : vector<64x128xf32>
    %c4_i32 = arith.constant 4 : i32
    %109 = arith.muli %arg1, %c4_i32 : i32
    %c0_43 = arith.constant 0 : index
    %110 = arith.index_cast %109 : i32 to index
    %c0_44 = arith.constant 0 : index
    %c0_45 = arith.constant 0 : index
    %111 = vector.load %arg2[%c0_43, %110, %c0_44, %c0_45] : memref<1x16x16x128xbf16, #tpu.memory_space<vmem>>, vector<1x4x16x128xbf16>
    %112 = vector.shape_cast %111 : vector<1x4x16x128xbf16> to vector<4x16x128xbf16>
    %113 = vector.shape_cast %112 : vector<4x16x128xbf16> to vector<64x128xbf16>
    %114 = arith.extf %113 : vector<64x128xbf16> to vector<64x128xf32>
    %115 = arith.addf %108, %114 : vector<64x128xf32>
    %cst_46 = arith.constant 0.000000e+00 : f32
    %116 = vector.broadcast %cst_46 : f32 to vector<64x128xf32>
    %117 = arith.maximumf %115, %116 : vector<64x128xf32>
    %118 = vector.shape_cast %117 : vector<64x128xf32> to vector<4x16x128xf32>
    %119 = arith.truncf %118 : vector<4x16x128xf32> to vector<4x16x128xbf16>
    %c0_47 = arith.constant 0 : index
    %c0_48 = arith.constant 0 : index
    %c0_49 = arith.constant 0 : index
    %c0_50 = arith.constant 0 : index
    %120 = vector.load %arg12[%c0_47, %c0_48, %c0_49, %c0_50] : memref<1x4x16x128xbf16, #tpu.memory_space<vmem>>, vector<1x4x16x128xbf16>
    %121 = vector.shape_cast %120 : vector<1x4x16x128xbf16> to vector<4x16x128xbf16>
    %122 = vector.shape_cast %119 : vector<4x16x128xbf16> to vector<1x4x16x128xbf16>
    tpu.vector_store %arg12[%c0_47, %c0_48, %c0_49, %c0_50], %122 {strides = array<i32>} : memref<1x4x16x128xbf16, #tpu.memory_space<vmem>>, vector<1x4x16x128xbf16>,
    return
  }
  func.func @transform_0(%arg0: i32, %arg1: i32) -> (i32, i32, i32, i32) {
    %c0_i32 = arith.constant 0 : i32
    %c0_i32_0 = arith.constant 0 : i32
    %c0_i32_1 = arith.constant 0 : i32
    %c0_i32_2 = arith.constant 0 : i32
    return %arg0, %c0_i32, %c0_i32_0, %c0_i32_1 : i32, i32, i32, i32
  }
  func.func @transform_1(%arg0: i32, %arg1: i32) -> (i32, i32) {
    %c0_i32 = arith.constant 0 : i32
    %c0_i32_0 = arith.constant 0 : i32
    %c0_i32_1 = arith.constant 0 : i32
    return %c0_i32, %c0_i32_0 : i32, i32
  }
  func.func @transform_2(%arg0: i32, %arg1: i32) -> (i32, i32) {
    %c0_i32 = arith.constant 0 : i32
    %c0_i32_0 = arith.constant 0 : i32
    %c0_i32_1 = arith.constant 0 : i32
    return %c0_i32, %c0_i32_0 : i32, i32
  }
  func.func @transform_3(%arg0: i32, %arg1: i32) -> (i32, i32) {
    %c0_i32 = arith.constant 0 : i32
    %c0_i32_0 = arith.constant 0 : i32
    %c0_i32_1 = arith.constant 0 : i32
    return %c0_i32, %c0_i32_0 : i32, i32
  }
  func.func @transform_4(%arg0: i32, %arg1: i32) -> (i32, i32) {
    %c0_i32 = arith.constant 0 : i32
    %c0_i32_0 = arith.constant 0 : i32
    %c0_i32_1 = arith.constant 0 : i32
    return %c0_i32, %c0_i32_0 : i32, i32
  }
  func.func @transform_5(%arg0: i32, %arg1: i32) -> (i32, i32) {
    %c0_i32 = arith.constant 0 : i32
    %c0_i32_0 = arith.constant 0 : i32
    %c0_i32_1 = arith.constant 0 : i32
    return %c0_i32, %c0_i32_0 : i32, i32
  }
  func.func @transform_6(%arg0: i32, %arg1: i32) -> (i32, i32) {
    %c0_i32 = arith.constant 0 : i32
    %c0_i32_0 = arith.constant 0 : i32
    %c0_i32_1 = arith.constant 0 : i32
    return %c0_i32, %c0_i32_0 : i32, i32
  }
  func.func @transform_7(%arg0: i32, %arg1: i32) -> (i32, i32) {
    %c0_i32 = arith.constant 0 : i32
    %c0_i32_0 = arith.constant 0 : i32
    %c0_i32_1 = arith.constant 0 : i32
    return %c0_i32, %c0_i32_0 : i32, i32
  }
  func.func @transform_8(%arg0: i32, %arg1: i32) -> (i32, i32) {
    %c0_i32 = arith.constant 0 : i32
    %c0_i32_0 = arith.constant 0 : i32
    %c0_i32_1 = arith.constant 0 : i32
    return %c0_i32, %c0_i32_0 : i32, i32
  }
  func.func @transform_9(%arg0: i32, %arg1: i32) -> (i32, i32) {
    %c0_i32 = arith.constant 0 : i32
    %c0_i32_0 = arith.constant 0 : i32
    %c0_i32_1 = arith.constant 0 : i32
    return %c0_i32, %c0_i32_0 : i32, i32
  }
  func.func @transform_10(%arg0: i32, %arg1: i32) -> (i32, i32, i32, i32) {
    %c0_i32 = arith.constant 0 : i32
    %c0_i32_0 = arith.constant 0 : i32
    %c0_i32_1 = arith.constant 0 : i32
    return %arg0, %arg1, %c0_i32, %c0_i32_0 : i32, i32, i32, i32
  }
}

</mosaic_0001>

<bundles_post_ra>
// kernel: tpu_custom_call.1
= control target key start
LH: loop header
LB: loop body
LE: loop exit
PB: predicated region body
PF: predicated region fallthrough
CT: control target
= control target key end

     0   :  { %s4250_s0 = inlined_call_operand.vmem [shape: bf16[2,16,16,128], index: 0, kind: input, shape index: {}]   ;;  %s4251_s1 = inlined_call_operand.vmem [shape: bf16[128,32], index: 1, kind: input, shape index: {}]   ;;  %s4252_s2 = inlined_call_operand.hbm [shape: f32[1,32], index: 2, kind: input, shape index: {}]   ;;  %s4253_s3 = inlined_call_operand.vmem [shape: f32[1,32], index: 3, kind: input, shape index: {}]   ;;  %s4254_s4 = inlined_call_operand.vmem [shape: bf16[288,32], index: 4, kind: input, shape index: {}]   ;;  %s4255_s5 = inlined_call_operand.vmem [shape: f32[1,32], index: 5, kind: input, shape index: {}]   ;;  %s4256_s6 = inlined_call_operand.vmem [shape: f32[1,32], index: 6, kind: input, shape index: {}]   ;;  %s4257_s7 = inlined_call_operand.vmem [shape: bf16[32,128], index: 7, kind: input, shape index: {}]   ;;  %s4258_s8 = inlined_call_operand.vmem [shape: f32[1,128], index: 8, kind: input, shape index: {}]   ;;  %s4259_s9 = inlined_call_operand.vmem [shape: f32[1,128], index: 9, kind: input, shape index: {}]   ;;  %s4260_s10 = inlined_call_operand.hbm [shape: bf16[2,16,16,128], index: 10, kind: output, shape index: {}]  }
   0x1   :  { %4278 = sst [smem:[#allocation12_spill]] %s4252_s2 }
   0x2   :  { %15 = vsyncpa [#allocation4], 0 }
   0x3   :  { %16 = vsyncpa [#allocation5], 0 }
   0x4   :  { %18 = vsyncpa [#allocation5 + $0x1], 0  ;;  %s3196_s13 = smov 0   ;;  %s3198_s14 = smov 0  }
   0x5   :  { %s3200_s15 = smov 0   ;;  %s3202_s16 = smov 0  }
   0x6   :  { %s3204_s17 = smov 0   ;;  %s3206_s18 = smov 0  }
   0x7   :  { %s3208_s19 = smov 0   ;;  %s3210_s20 = smov 0  }
   0x8 LB: > { %4279 = sst [smem:[#allocation9_spill]] %s3105_s13  ;;  %s2556_s21 = sadd.s32 4294967295, %s3133_s20   ;;  %s3133_s20 = sphi %s3210_s20, %s24_s20   ;;  %s3129_s19 = sphi %s3208_s19, %s4404_s19   ;;  %s3125_s18 = sphi %s3206_s18, %s4399_s18   ;;  %s3121_s17 = sphi %s3204_s17, %s4403_s17   ;;  %s3117_s16 = sphi %s3202_s16, %s4398_s16   ;;  %s3113_s15 = sphi %s3200_s15, %s4402_s15   ;;  %s3109_s14 = sphi %s3198_s14, %s4401_s14   ;;  %s3105_s13 = sphi %s3196_s13, %s4400_s13  }
   0x9   : > { %4280 = sst [smem:[#allocation10_spill]] %s3125_s18  ;;  %s2557_s22 = sadd.s32 4294967294, %s3133_s20  }
   0xa   : > { %s33_s23 = sadd.s32 1, %s3125_s18  ;;  %s36_s24 = sadd.s32 1, %s3129_s19 }
   0xb   : > { %p34_p0 = scmp.ge.s32.totalorder %s33_s23, 4  ;;  %s260_s25 = sadd.s32 1, %s3113_s15 }
   0xc   : > { %p270_p1 = scmp.ne.s32.totalorder %s3113_s15, %s3109_s14  ;;  %p271_p2 = scmp.eq.s32.totalorder %s2556_s21, 7 }
   0xd   : > { %s4406_s23 = smov (%p34_p0, %s33_s23), 0  ;;  %s4408_s24 = smov (!%p34_p0, %s36_s24), %s3129_s19 }
   0xe   : > { %4281 = sst [smem:[#allocation11_spill]] %s4406_s23  ;;  %s256_s26 = ssub.s32 %s3125_s18, %s4406_s23 }
   0xf   : > { %p3248_p3 = por %p271_p2, %p270_p1  ;;  %p38_p4 = scmp.ge.s32.totalorder %s4408_s24, 2 }
  0x10   : > { %p276_p5 = scmp.ne.s32.totalorder %s3109_s14, %s3105_s13  ;;  %p277_p6 = scmp.eq.s32.totalorder %s2557_s22, 7 }
  0x11   : > { %p2558_p7 = scmp.ge.s32.totalorder %s3133_s20, 1  ;;  %s4410_s24 = smov (%p38_p4, %s4408_s24), 0 }
  0x12   : > { %p3257_p8 = por %p277_p6, %p276_p5  ;;  %p284_p9 = scmp.lt.s32.totalorder %s3133_s20, 9 }
  0x13   : > { %s255_s29 = ssub.s32 %s3129_s19, %s4410_s24  ;;  %p2926_p12 = scmp.eq.s32.totalorder %s2556_s21, 0 }
  0x14   : > { %s257_s30 = sor.u32 %s256_s26, %s255_s29  ;;  %p285_p10 = pnand %p2558_p7, %p284_p9 }
  0x15   : > { %p258_p11 = scmp.eq.s32.totalorder %s257_s30, 0  ;;  %s4284_s2 = sld [smem:[#allocation12_spill]] }
  0x16   : > { %p2918_p13 = pneg %p285_p10  ;;  %s3135_s18 = smov [#allocation3]  }
  0x17   : > { %s3268_s22 = scalar_select %p258_p11, %s3113_s15, %s260_s25  }
  0x18   : > { %s301_s13 = sshll.u32 %s3135_s18, 4  ;;  %p2919_p0 = pnand %p2926_p12, %p2918_p13  ;;  %s302_s13 = int_to_ptr.vmem [resolvable:$true] %s301_s13 }
  0x19   : > { %343 = sbr.rel (%p285_p10) target bundleno = 775 (0x307), region = 60 }
  0x1b   : > { %s299_s23 = sshll.u32 %s4284_s2, 4  ;;  %s300_s23 = int_to_ptr.hbm [resolvable:$true] %s299_s23 }
  0x1c   : > { %2921 = dma.hbm_to_vmem [thread:$0]  (!%p2919_p0), %s300_s23, 16, %s302_s13, [#allocation4]  }
  0x1e   : > { %3096 = dma.done.wait (%p2926_p12), [#allocation4], 16  }
  0x1f   : > { %3098 = vsyncadd (%p2926_p12), [#allocation4], 4294967280  ;;  %s4264_s21 = sand.u32 1, %s3109_s14   ;;  %p382_p1 = scmp.lt.s32.totalorder %s3121_s17, 1 }
  0x20   : > { %s2563_s26 = sshll.u32 %s4264_s21, 5  ;;  %p2566_p2 = scmp.ne.s32.totalorder %s3117_s16, 0 }
  0x21   : > { %s383_s29 = scalar_select %p382_p1, %s3121_s17, 1 }
  0x22   : > { %s3280_s12 = scalar_lea.vmem [#allocation6], %s2563_s26  ;;  %394 = sbr.rel (%p2566_p2) target bundleno = 268 (0x10c), region = 68 }
  0x23   : > { %s2794_s25 = sshll.u32 %s383_s29, 7 }
  0x24   : > { %s3278_s18 = scalar_lea.vmem %s4250_s0, %s2794_s25 }
  0x27   : > { %v2818_v0 = vld [vmem:[%s4251_s1 + $0x38] sm:$0xff]  ;;  %v2817_v1 = vld [vmem:[%s4251_s1 + $0x30] sm:$0xff]  ;;  %v2816_v2 = vld [vmem:[%s4251_s1 + $0x28] sm:$0xff]  ;;  %vm780_vm0 = vcmask 261120  }
  0x28   : > { %587 = vmatpush.bf16.msra.mxu0 %v2818_v0  ;;  %2884 = vmatpush.bf16.msra.mxu1 %v2818_v0  ;;  %v2815_v3 = vld [vmem:[%s4251_s1 + $0x20] sm:$0xff]  ;;  %v2814_v4 = vld [vmem:[%s4251_s1 + $0x18] sm:$0xff]  ;;  %v2813_v5 = vld [vmem:[%s4251_s1 + $0x10] sm:$0xff] }
  0x29   : > { %2885 = vmatpush.bf16.msra.mxu2 %v2818_v0  ;;  %2886 = vmatpush.bf16.msra.mxu3 %v2818_v0  ;;  %v2812_v6 = vld [vmem:[%s4251_s1 + $0x8] sm:$0xff]  ;;  %v2811_v7 = vld [vmem:[%s4251_s1] sm:$0xff]  ;;  %v2797_v16 = vld [vmem:[%s3278_s18 + $0x10] sm:$0xff] }
  0x2a   : > { %v2795_v8 = vld [vmem:[%s3278_s18] sm:$0xff]  ;;  %v2796_v12 = vld [vmem:[%s3278_s18 + $0x8] sm:$0xff]  ;;  %v2801_v17 = vld [vmem:[%s3278_s18 + $0x30] sm:$0xff] }
  0x2b   : > { %v2799_v9 = vld [vmem:[%s3278_s18 + $0x20] sm:$0xff]  ;;  %v2800_v13 = vld [vmem:[%s3278_s18 + $0x28] sm:$0xff]  ;;  %v2805_v18 = vld [vmem:[%s3278_s18 + $0x50] sm:$0xff] }
  0x2c   : > { %588 = vmatpush.bf16.msra.mxu0 %v2817_v1  ;;  %2887 = vmatpush.bf16.msra.mxu1 %v2817_v1  ;;  %v2803_v10 = vld [vmem:[%s3278_s18 + $0x40] sm:$0xff]  ;;  %v2804_v14 = vld [vmem:[%s3278_s18 + $0x48] sm:$0xff]  ;;  %v2809_v19 = vld [vmem:[%s3278_s18 + $0x70] sm:$0xff] }
  0x2d   : > { %2888 = vmatpush.bf16.msra.mxu2 %v2817_v1  ;;  %2889 = vmatpush.bf16.msra.mxu3 %v2817_v1  ;;  %v2807_v11 = vld [vmem:[%s3278_s18 + $0x60] sm:$0xff]  ;;  %v2808_v15 = vld [vmem:[%s3278_s18 + $0x68] sm:$0xff]  ;;  %v2798_v20 = vld [vmem:[%s3278_s18 + $0x18] sm:$0xff] }
  0x2e   : > { %v2802_v21 = vld [vmem:[%s3278_s18 + $0x38] sm:$0xff]  ;;  %v3323_v24 = vld [vmem:[#allocation3] ss:$0 sm:$0xff]  ;;  %v3328_v25 = vld [vmem:[%s4253_s3] ss:$0 sm:$0xff] }
  0x2f   : > { %v2806_v22 = vld [vmem:[%s3278_s18 + $0x58] sm:$0xff] }
  0x30   : > { %589 = vmatpush.bf16.msra.mxu0 %v2816_v2  ;;  %2890 = vmatpush.bf16.msra.mxu1 %v2816_v2  ;;  %v2810_v23 = vld [vmem:[%s3278_s18 + $0x78] sm:$0xff] }
  0x31   : > { %2891 = vmatpush.bf16.msra.mxu2 %v2816_v2  ;;  %2892 = vmatpush.bf16.msra.mxu3 %v2816_v2 }
  0x34   : > { %590 = vmatpush.bf16.msra.mxu0 %v2815_v3  ;;  %2893 = vmatpush.bf16.msra.mxu1 %v2815_v3 }
  0x35   : > { %2894 = vmatpush.bf16.msra.mxu2 %v2815_v3  ;;  %2895 = vmatpush.bf16.msra.mxu3 %v2815_v3 }
  0x38   : > { %591 = vmatpush.bf16.msra.mxu0 %v2814_v4  ;;  %2896 = vmatpush.bf16.msra.mxu1 %v2814_v4 }
  0x39   : > { %2897 = vmatpush.bf16.msra.mxu2 %v2814_v4  ;;  %2898 = vmatpush.bf16.msra.mxu3 %v2814_v4 }
  0x3c   : > { %592 = vmatpush.bf16.msra.mxu0 %v2813_v5  ;;  %2899 = vmatpush.bf16.msra.mxu1 %v2813_v5 }
  0x3d   : > { %2900 = vmatpush.bf16.msra.mxu2 %v2813_v5  ;;  %2901 = vmatpush.bf16.msra.mxu3 %v2813_v5 }
  0x40   : > { %593 = vmatpush.bf16.msra.mxu0 %v2812_v6  ;;  %2902 = vmatpush.bf16.msra.mxu1 %v2812_v6 }
  0x41   : > { %2903 = vmatpush.bf16.msra.mxu2 %v2812_v6  ;;  %2904 = vmatpush.bf16.msra.mxu3 %v2812_v6 }
  0x44   : > { %594 = vmatpush.bf16.msra.mxu0 %v2811_v7  ;;  %2905 = vmatpush.bf16.msra.mxu1 %v2811_v7 }
  0x45   : > { %2906 = vmatpush.bf16.msra.mxu2 %v2811_v7  ;;  %2907 = vmatpush.bf16.msra.mxu3 %v2811_v7 }
  0x47   : > { %595 = vmatmul.bf16.vlgmr.msra.gmra.mxu0 %v2795_v8  ;;  %615 = vmatmul.bf16.vlgmr.msra.gmra.mxu1 %v2799_v9 }
  0x48   : > { %635 = vmatmul.bf16.vlgmr.msra.gmra.mxu2 %v2803_v10  ;;  %655 = vmatmul.bf16.vlgmr.msra.gmra.mxu3 %v2807_v11 }
  0x57   : > { %600 = vmatmul.bf16.gmra.mxu0 %v2796_v12  ;;  %620 = vmatmul.bf16.gmra.mxu1 %v2800_v13 }
  0x58   : > { %640 = vmatmul.bf16.gmra.mxu2 %v2804_v14  ;;  %660 = vmatmul.bf16.gmra.mxu3 %v2808_v15 }
  0x67   : > { %605 = vmatmul.bf16.gmra.mxu0 %v2797_v16  ;;  %625 = vmatmul.bf16.gmra.mxu1 %v2801_v17 }
  0x68   : > { %645 = vmatmul.bf16.gmra.mxu2 %v2805_v18  ;;  %665 = vmatmul.bf16.gmra.mxu3 %v2809_v19 }
  0x77   : > { %610 = vmatmul.bf16.gmra.mxu0 %v2798_v20  ;;  %630 = vmatmul.bf16.gmra.mxu1 %v2802_v21 }
  0x78   : > { %650 = vmatmul.bf16.gmra.mxu2 %v2806_v22  ;;  %670 = vmatmul.bf16.gmra.mxu3 %v2810_v23 }
  0xc4   : > { %v596_v26 = vpop.f32.mrf.mxu0  ;;  %v616_v27 = vpop.f32.mrf.mxu1 }
  0xc5   : > { %v680_v28 = vmul.f32 %v3323_v24, %v596_v26  ;;  %v688_v29 = vmul.f32 %v3323_v24, %v616_v27 }
  0xc7   : > { %v716_v30 = vadd.f32 %v3328_v25, %v680_v28  ;;  %v724_v31 = vadd.f32 %v3328_v25, %v688_v29 }
  0xc9   : > { %v748_v32 = vmax.f32 %v716_v30, 0.0  ;;  %v756_v33 = vmax.f32 %v724_v31, 0.0 }
  0xcb   : > { %787 = vst.msk [vmem:[#allocation2 + $0x18] sm:$0xff] %vm780_vm0, %v748_v32  ;;  %v636_v34 = vpop.f32.mrf.mxu2  ;;  %v656_v35 = vpop.f32.mrf.mxu3 }
  0xcc   : > { %795 = vst.msk [vmem:[#allocation2 + $0x58] sm:$0xff] %vm780_vm0, %v756_v33  ;;  %v696_v36 = vmul.f32 %v3323_v24, %v636_v34  ;;  %v704_v37 = vmul.f32 %v3323_v24, %v656_v35  ;;  %v598_v38 = vpop.f32.mrf.mxu0  ;;  %v618_v39 = vpop.f32.mrf.mxu1 }
  0xcd   : > { %v681_v40 = vmul.f32 %v3323_v24, %v598_v38  ;;  %v689_v41 = vmul.f32 %v3323_v24, %v618_v39 }
  0xce   : > { %v732_v42 = vadd.f32 %v3328_v25, %v696_v36  ;;  %v740_v43 = vadd.f32 %v3328_v25, %v704_v37 }
  0xcf   : > { %v717_v44 = vadd.f32 %v3328_v25, %v681_v40  ;;  %v725_v45 = vadd.f32 %v3328_v25, %v689_v41 }
  0xd0   : > { %v764_v46 = vmax.f32 %v732_v42, 0.0  ;;  %v772_v47 = vmax.f32 %v740_v43, 0.0 }
  0xd1   : > { %v749_v48 = vmax.f32 %v717_v44, 0.0  ;;  %v757_v49 = vmax.f32 %v725_v45, 0.0 }
  0xd2   : > { %803 = vst.msk [vmem:[#allocation2 + $0x98] sm:$0xff] %vm780_vm0, %v764_v46  ;;  %v3136_v46 = vmov 0.0  }
  0xd3   : > { %811 = vst.msk [vmem:[#allocation2 + $0xd8] sm:$0xff] %vm780_vm0, %v772_v47  ;;  %v638_v50 = vpop.f32.mrf.mxu2  ;;  %v658_v51 = vpop.f32.mrf.mxu3 }
  0xd4   : > { %788 = vst.msk [vmem:[#allocation2 + $0x20] sm:$0xff] %vm780_vm0, %v749_v48  ;;  %v697_v52 = vmul.f32 %v3323_v24, %v638_v50  ;;  %v705_v53 = vmul.f32 %v3323_v24, %v658_v51  ;;  %v601_v54 = vpop.f32.mrf.mxu0  ;;  %v621_v55 = vpop.f32.mrf.mxu1 }
  0xd5   : > { %796 = vst.msk [vmem:[#allocation2 + $0x60] sm:$0xff] %vm780_vm0, %v757_v49  ;;  %v682_v56 = vmul.f32 %v3323_v24, %v601_v54  ;;  %v690_v57 = vmul.f32 %v3323_v24, %v621_v55 }
  0xd6   : > { %v733_v58 = vadd.f32 %v3328_v25, %v697_v52  ;;  %v741_v59 = vadd.f32 %v3328_v25, %v705_v53  ;;  %781 = vst.msk [vmem:[#allocation2] sm:$0xff] %vm780_vm0, %v3136_v46 }
  0xd7   : > { %v718_v60 = vadd.f32 %v3328_v25, %v682_v56  ;;  %v726_v61 = vadd.f32 %v3328_v25, %v690_v57  ;;  %782 = vst.msk [vmem:[#allocation2 + $0x8] sm:$0xff] %vm780_vm0, %v3136_v46 }
  0xd8   : > { %v765_v62 = vmax.f32 %v733_v58, 0.0  ;;  %v773_v63 = vmax.f32 %v741_v59, 0.0  ;;  %783 = vst.msk [vmem:[#allocation2 + $0x10] sm:$0xff] %vm780_vm0, %v3136_v46 }
  0xd9   : > { %v750_v0 = vmax.f32 %v718_v60, 0.0  ;;  %v758_v1 = vmax.f32 %v726_v61, 0.0  ;;  %784 = vst.msk [vmem:[#allocation2 + $0x118] sm:$0xff] %vm780_vm0, %v3136_v46 }
  0xda   : > { %804 = vst.msk [vmem:[#allocation2 + $0xa0] sm:$0xff] %vm780_vm0, %v765_v62 }
  0xdb   : > { %812 = vst.msk [vmem:[#allocation2 + $0xe0] sm:$0xff] %vm780_vm0, %v773_v63  ;;  %v641_v2 = vpop.f32.mrf.mxu2  ;;  %v661_v3 = vpop.f32.mrf.mxu3 }
  0xdc   : > { %789 = vst.msk [vmem:[#allocation2 + $0x28] sm:$0xff] %vm780_vm0, %v750_v0  ;;  %v698_v4 = vmul.f32 %v3323_v24, %v641_v2  ;;  %v706_v5 = vmul.f32 %v3323_v24, %v661_v3  ;;  %v603_v6 = vpop.f32.mrf.mxu0  ;;  %v623_v7 = vpop.f32.mrf.mxu1 }
  0xdd   : > { %797 = vst.msk [vmem:[#allocation2 + $0x68] sm:$0xff] %vm780_vm0, %v758_v1  ;;  %v683_v8 = vmul.f32 %v3323_v24, %v603_v6  ;;  %v691_v9 = vmul.f32 %v3323_v24, %v623_v7 }
  0xde   : > { %v734_v10 = vadd.f32 %v3328_v25, %v698_v4  ;;  %v742_v11 = vadd.f32 %v3328_v25, %v706_v5  ;;  %785 = vst.msk [vmem:[#allocation2 + $0x120] sm:$0xff] %vm780_vm0, %v3136_v46 }
  0xdf   : > { %v719_v12 = vadd.f32 %v3328_v25, %v683_v8  ;;  %v727_v13 = vadd.f32 %v3328_v25, %v691_v9  ;;  %786 = vst.msk [vmem:[#allocation2 + $0x128] sm:$0xff] %vm780_vm0, %v3136_v46 }
  0xe0   : > { %v766_v14 = vmax.f32 %v734_v10, 0.0  ;;  %v774_v15 = vmax.f32 %v742_v11, 0.0 }
  0xe1   : > { %v751_v16 = vmax.f32 %v719_v12, 0.0  ;;  %v759_v17 = vmax.f32 %v727_v13, 0.0 }
  0xe2   : > { %805 = vst.msk [vmem:[#allocation2 + $0xa8] sm:$0xff] %vm780_vm0, %v766_v14 }
  0xe3   : > { %813 = vst.msk [vmem:[#allocation2 + $0xe8] sm:$0xff] %vm780_vm0, %v774_v15  ;;  %v643_v18 = vpop.f32.mrf.mxu2  ;;  %v663_v19 = vpop.f32.mrf.mxu3 }
  0xe4   : > { %790 = vst.msk [vmem:[#allocation2 + $0x30] sm:$0xff] %vm780_vm0, %v751_v16  ;;  %v699_v20 = vmul.f32 %v3323_v24, %v643_v18  ;;  %v707_v21 = vmul.f32 %v3323_v24, %v663_v19  ;;  %v606_v22 = vpop.f32.mrf.mxu0  ;;  %v626_v23 = vpop.f32.mrf.mxu1 }
  0xe5   : > { %798 = vst.msk [vmem:[#allocation2 + $0x70] sm:$0xff] %vm780_vm0, %v759_v17  ;;  %v684_v26 = vmul.f32 %v3323_v24, %v606_v22  ;;  %v692_v27 = vmul.f32 %v3323_v24, %v626_v23 }
  0xe6   : > { %v735_v28 = vadd.f32 %v3328_v25, %v699_v20  ;;  %v743_v29 = vadd.f32 %v3328_v25, %v707_v21 }
  0xe7   : > { %v720_v30 = vadd.f32 %v3328_v25, %v684_v26  ;;  %v728_v31 = vadd.f32 %v3328_v25, %v692_v27 }
  0xe8   : > { %v767_v32 = vmax.f32 %v735_v28, 0.0  ;;  %v775_v33 = vmax.f32 %v743_v29, 0.0 }
  0xe9   : > { %v752_v34 = vmax.f32 %v720_v30, 0.0  ;;  %v760_v35 = vmax.f32 %v728_v31, 0.0 }
  0xea   : > { %806 = vst.msk [vmem:[#allocation2 + $0xb0] sm:$0xff] %vm780_vm0, %v767_v32 }
  0xeb   : > { %814 = vst.msk [vmem:[#allocation2 + $0xf0] sm:$0xff] %vm780_vm0, %v775_v33  ;;  %v646_v36 = vpop.f32.mrf.mxu2  ;;  %v666_v37 = vpop.f32.mrf.mxu3 }
  0xec   : > { %791 = vst.msk [vmem:[#allocation2 + $0x38] sm:$0xff] %vm780_vm0, %v752_v34  ;;  %v700_v38 = vmul.f32 %v3323_v24, %v646_v36  ;;  %v708_v39 = vmul.f32 %v3323_v24, %v666_v37  ;;  %v608_v40 = vpop.f32.mrf.mxu0  ;;  %v628_v41 = vpop.f32.mrf.mxu1 }
  0xed   : > { %799 = vst.msk [vmem:[#allocation2 + $0x78] sm:$0xff] %vm780_vm0, %v760_v35  ;;  %v685_v42 = vmul.f32 %v3323_v24, %v608_v40  ;;  %v693_v43 = vmul.f32 %v3323_v24, %v628_v41 }
  0xee   : > { %v736_v44 = vadd.f32 %v3328_v25, %v700_v38  ;;  %v744_v45 = vadd.f32 %v3328_v25, %v708_v39 }
  0xef   : > { %v721_v47 = vadd.f32 %v3328_v25, %v685_v42  ;;  %v729_v48 = vadd.f32 %v3328_v25, %v693_v43 }
  0xf0   : > { %v768_v49 = vmax.f32 %v736_v44, 0.0  ;;  %v776_v50 = vmax.f32 %v744_v45, 0.0 }
  0xf1   : > { %v753_v51 = vmax.f32 %v721_v47, 0.0  ;;  %v761_v52 = vmax.f32 %v729_v48, 0.0 }
  0xf2   : > { %807 = vst.msk [vmem:[#allocation2 + $0xb8] sm:$0xff] %vm780_vm0, %v768_v49 }
  0xf3   : > { %815 = vst.msk [vmem:[#allocation2 + $0xf8] sm:$0xff] %vm780_vm0, %v776_v50  ;;  %v648_v53 = vpop.f32.mrf.mxu2  ;;  %v668_v54 = vpop.f32.mrf.mxu3 }
  0xf4   : > { %792 = vst.msk [vmem:[#allocation2 + $0x40] sm:$0xff] %vm780_vm0, %v753_v51  ;;  %v701_v55 = vmul.f32 %v3323_v24, %v648_v53  ;;  %v709_v56 = vmul.f32 %v3323_v24, %v668_v54  ;;  %v611_v57 = vpop.f32.mrf.mxu0  ;;  %v631_v58 = vpop.f32.mrf.mxu1 }
  0xf5   : > { %800 = vst.msk [vmem:[#allocation2 + $0x80] sm:$0xff] %vm780_vm0, %v761_v52  ;;  %v686_v59 = vmul.f32 %v3323_v24, %v611_v57  ;;  %v694_v60 = vmul.f32 %v3323_v24, %v631_v58 }
  0xf6   : > { %v737_v61 = vadd.f32 %v3328_v25, %v701_v55  ;;  %v745_v62 = vadd.f32 %v3328_v25, %v709_v56 }
  0xf7   : > { %v722_v63 = vadd.f32 %v3328_v25, %v686_v59  ;;  %v730_v0 = vadd.f32 %v3328_v25, %v694_v60 }
  0xf8   : > { %v769_v1 = vmax.f32 %v737_v61, 0.0  ;;  %v777_v2 = vmax.f32 %v745_v62, 0.0 }
  0xf9   : > { %v754_v3 = vmax.f32 %v722_v63, 0.0  ;;  %v762_v4 = vmax.f32 %v730_v0, 0.0 }
  0xfa   : > { %808 = vst.msk [vmem:[#allocation2 + $0xc0] sm:$0xff] %vm780_vm0, %v769_v1 }
  0xfb   : > { %816 = vst.msk [vmem:[#allocation2 + $0x100] sm:$0xff] %vm780_vm0, %v777_v2  ;;  %v651_v5 = vpop.f32.mrf.mxu2  ;;  %v671_v6 = vpop.f32.mrf.mxu3 }
  0xfc   : > { %793 = vst.msk [vmem:[#allocation2 + $0x48] sm:$0xff] %vm780_vm0, %v754_v3  ;;  %v702_v7 = vmul.f32 %v3323_v24, %v651_v5  ;;  %v710_v8 = vmul.f32 %v3323_v24, %v671_v6  ;;  %v613_v9 = vpop.f32.mrf.mxu0  ;;  %v633_v10 = vpop.f32.mrf.mxu1 }
  0xfd   : > { %801 = vst.msk [vmem:[#allocation2 + $0x88] sm:$0xff] %vm780_vm0, %v762_v4  ;;  %v687_v11 = vmul.f32 %v3323_v24, %v613_v9  ;;  %v695_v12 = vmul.f32 %v3323_v24, %v633_v10 }
  0xfe   : > { %v738_v13 = vadd.f32 %v3328_v25, %v702_v7  ;;  %v746_v14 = vadd.f32 %v3328_v25, %v710_v8 }
  0xff   : > { %v723_v15 = vadd.f32 %v3328_v25, %v687_v11  ;;  %v731_v16 = vadd.f32 %v3328_v25, %v695_v12 }
 0x100   : > { %v770_v17 = vmax.f32 %v738_v13, 0.0  ;;  %v778_v18 = vmax.f32 %v746_v14, 0.0 }
 0x101   : > { %v755_v19 = vmax.f32 %v723_v15, 0.0  ;;  %v763_v20 = vmax.f32 %v731_v16, 0.0 }
 0x102   : > { %809 = vst.msk [vmem:[#allocation2 + $0xc8] sm:$0xff] %vm780_vm0, %v770_v17 }
 0x103   : > { %817 = vst.msk [vmem:[#allocation2 + $0x108] sm:$0xff] %vm780_vm0, %v778_v18  ;;  %v653_v21 = vpop.f32.mrf.mxu2  ;;  %v673_v22 = vpop.f32.mrf.mxu3 }
 0x104   : > { %794 = vst.msk [vmem:[#allocation2 + $0x50] sm:$0xff] %vm780_vm0, %v755_v19  ;;  %v703_v23 = vmul.f32 %v3323_v24, %v653_v21  ;;  %v711_v26 = vmul.f32 %v3323_v24, %v673_v22 }
 0x105   : > { %802 = vst.msk [vmem:[#allocation2 + $0x90] sm:$0xff] %vm780_vm0, %v763_v20 }
 0x106   : > { %v739_v27 = vadd.f32 %v3328_v25, %v703_v23  ;;  %v747_v28 = vadd.f32 %v3328_v25, %v711_v26 }
 0x108   : > { %v771_v29 = vmax.f32 %v739_v27, 0.0  ;;  %v779_v30 = vmax.f32 %v747_v28, 0.0 }
 0x10a   : > { %810 = vst.msk [vmem:[#allocation2 + $0xd0] sm:$0xff] %vm780_vm0, %v771_v29 }
 0x10b   : > { %818 = vst.msk [vmem:[#allocation2 + $0x110] sm:$0xff] %vm780_vm0, %v779_v30 }
 0x10c PF: > { %v2822_v31 = vld [vmem:[%s4254_s4 + $0x18] sm:$0xff]  ;;  %s2663_s13 = sshll.u32 %s3117_s16, 6  ;;  %v2820_v24 = vld [vmem:[%s4254_s4 + $0x8] sm:$0xff]  ;;  %v819_v32 = vlaneseq  ;;  %vm3137_vm1 = vmmov 1   ;;  %v2821_v33 = vld [vmem:[%s4254_s4 + $0x10] sm:$0xff]  ;;  %vm4266_vm3 = vcmask 261120  }
 0x10d   : > { %vm3439_vm2 = vmpackc.low %vm3137_vm1, %vm3137_vm1  ;;  %2908 = vmatpush.bf16.msra.mxu2 %v2822_v31  ;;  %s3446_s30 = scalar_lea.vmem [#allocation2], %s2663_s13  ;;  %1178 = vmatpush.bf16.msra.mxu0 %v2822_v31  ;;  %v2819_v37 = vld [vmem:[%s4254_s4] sm:$0xff]  ;;  %v2824_v38 = vld [vmem:[%s4254_s4 + $0x28] sm:$0xff]  ;;  %v3138_v41 = vmov 0   ;;  %vm981_vm4 = vsmask.f32 3328 }
 0x10e   : > { %v3450_v36 = vshrl.u32 %v819_v32, 7  ;;  %1299 = vmatpush.bf16.msra.mxu1 %v2820_v24  ;;  %2910 = vmatpush.bf16.msra.mxu3 %v2820_v24  ;;  %v974_v42 = vsel %vm3439_vm2, 65537, %v3138_v41  ;;  %v3470_v46 = vunpack.c.l.b16 %v3138_v41  ;;  %v3475_v50 = vunpack.c.h.b16 %v3138_v41  ;;  %s2840_s29 = sshll.u32 %s3117_s16, 5  ;;  %s2790_s11 = sshll.u32 %s3121_s17, 5 }
 0x10f   : > { %v994_v54 = vshll.u32 %v974_v42, 16  ;;  %v998_v55 = vshrl.u32 %v974_v42, 16  ;;  %vm982_vm10 = vsmask.f32 7440  ;;  %vm1339_vm13 = vsmask.f32 256  ;;  %s4191_s25 = scalar_lea.vmem %s3278_s18, %s2840_s29 }
 0x110   : > { %v821_v39 = vadd.s32 8, %v3450_v36  ;;  %v822_v40 = vadd.s32 16, %v3450_v36  ;;  %v832_v44 = vand.u32 15, %v3450_v36  ;;  %vm3508_vm12 = vmor %vm981_vm4, %vm982_vm10  ;;  %vm1340_vm14 = vsmask.f32 4368  ;;  %s2841_s18 = sshll.u32 %s3117_s16, 3 }
 0x111   : > { %2909 = vmatpush.bf16.msra.mxu2 %v2821_v33  ;;  %1179 = vmatpush.bf16.msra.mxu0 %v2821_v33  ;;  %v3493_v61 = vrot.slane %v994_v54, 5  ;;  %v1000_v62 = vrot.slane %v998_v55, 4  ;;  %v1345_v2 = vrot.slane %v998_v55, 7  ;;  %v4311_v7 = vmov 0  ;;  %s2458_s23 = sadd.s32 %s2841_s18, %s2790_s11  ;;  %s2461_s16 = sshll.u32 %s3280_s12, 4  ;;  %s2462_s16 = int_to_ptr.vmem [resolvable:$true] %s2461_s16 }
 0x112   : > { %v947_v34 = vld [vmem:[%s3446_s30 + $0x28] sm:$0xff]  ;;  %v948_v35 = vld [vmem:[%s3446_s30 + $0x30] sm:$0xff]  ;;  %v3467_v45 = vld [vmem:[%s3446_s30] sm:$0xff]  ;;  %v839_v48 = vand.u32 15, %v821_v39  ;;  %v846_v49 = vand.u32 15, %v822_v40  ;;  %1300 = vmatpush.bf16.msra.mxu1 %v2819_v37  ;;  %vm924_vm5 = vcmp.ge.s32.totalorder %v832_v44, 1  ;;  %2911 = vmatpush.bf16.msra.mxu3 %v2819_v37 }
 0x113   : > { %v3463_v43 = vpack.c.bf16 %v948_v35, %v947_v34  ;;  %v3472_v47 = vpack.c.bf16 %v947_v34, %v947_v34  ;;  %v3477_v51 = vpack.c.bf16 %v948_v35, %v948_v35  ;;  %v943_v52 = vld [vmem:[%s3446_s30 + $0x8] sm:$0xff]  ;;  %v944_v53 = vld [vmem:[%s3446_s30 + $0x10] sm:$0xff]  ;;  %v3486_v57 = vld [vmem:[%s3446_s30 + $0x20] sm:$0xff]  ;;  %v956_v58 = vpack.c.bf16 %v3467_v45, %v3467_v45  ;;  %s2791_s13 = sshll.u32 %s2458_s23, 2 }
 0x114   : > { %vm926_vm6 = vcmp.ge.s32.totalorder %v846_v49, 1  ;;  %vm3481_vm7 = vcmp.le.s32.totalorder %v839_v48, 14  ;;  %vm965_vm8 = vmpackc.low %vm924_vm5, %vm924_vm5  ;;  %v1139_v59 = vpack.c.bf16 %v944_v53, %v943_v52  ;;  %v3497_v3 = vpack.c.bf16 %v943_v52, %v943_v52  ;;  %v949_v31 = vld [vmem:[%s3446_s30 + $0x38] sm:$0xff]  ;;  %v950_v24 = vld [vmem:[%s3446_s30 + $0x40] sm:$0xff]  ;;  %s2460_s26 = scalar_lea.hbm %s4260_s10, %s2791_s13  ;;  %s3055_s13 = scalar_lea.hbm %s4260_s10, 256 }
 0x115   : > { %1579 = vmatpush.bf16.msrb.mxu2 %v2824_v38  ;;  %vm967_vm9 = vmpackc.low %vm926_vm6, %vm926_vm6  ;;  %v973_v60 = vsel %vm965_vm8, 65537, %v3138_v41  ;;  %v3501_v4 = vpack.c.bf16 %v3486_v57, %v3486_v57  ;;  %v1001_v5 = vor.u32 %v1000_v62, %v3493_v61  ;;  %v3513_v11 = vor.u32 %v1345_v2, %v994_v54  ;;  %v3572_v49 = vld [vmem:[%s3446_s30 + $0x18] sm:$0xff]  ;;  %s2463_s17 = sshll.u32 %s2460_s26, 4  ;;  %s2464_s17 = int_to_ptr.hbm [resolvable:$true] %s2463_s17 }
 0x116   : > { %2674 = vmatmul.msk.bf16.vlgmr.msra.gmra.mxu2 %vm4266_vm3, %v3463_v43  ;;  %v975_v63 = vsel %vm967_vm9, 65537, %v3138_v41  ;;  %v985_v0 = vshll.u32 %v973_v60, 16  ;;  %v988_v1 = vshrl.u32 %v973_v60, 16  ;;  %2672 = vmatmul.msk.bf16.vlgmr.msra.gmra.mxu0 %vm4266_vm3, %v1139_v59  ;;  %vm1324_vm11 = vmpackc.low %vm3481_vm7, %vm3481_vm7  ;;  %v3539_v25 = vrot.slane %v1345_v2, 4  ;;  %s3049_s21 = sshra.s32 %s2464_s17, 4  ;;  %s3050_s21 = int_to_ptr.hbm [resolvable:$true] %s3049_s21 }
 0x117   : > { %v1004_v6 = vshll.u32 %v975_v63, 16  ;;  %v1332_v10 = vsel %vm1324_vm11, 65537, %v3138_v41  ;;  %v3515_v12 = vrot.slane %v1001_v5, 4  ;;  %v1008_v14 = vshrl.u32 %v975_v63, 16  ;;  %vm3547_vm6 = vmor %vm1339_vm13, %vm1340_vm14  ;;  %s3051_s18 = scalar_lea.hbm %s3050_s21, 32  ;;  %p3056_p7 = scmp.lt.s32.totalorder %s3050_s21, %s4260_s10 }
 0x118   : > { %v987_v8 = vrot.slane %v985_v0, 5  ;;  %v990_v9 = vrot.slane %v988_v1, 4  ;;  %v1351_v18 = vshrl.u32 %v1332_v10, 16  ;;  %v1354_v20 = vshll.u32 %v1332_v10, 16  ;;  %p3052_p4 = scmp.ne.s32.totalorder %s3050_s21, %s3051_s18  ;;  %p3057_p9 = scmp.lt.s32.totalorder %s3055_s13, %s3051_s18 }
 0x119   : > { %v3517_v13 = vrot.slane %v1004_v6, 5  ;;  %v1413_v21 = vunpack.c.l.b16 %v3513_v11  ;;  %v1010_v26 = vrot.slane %v1008_v14, 4  ;;  %v1414_v30 = vunpack.c.h.b16 %v3513_v11 }
 0x11a   : > { %v991_v15 = vor.u32 %v990_v9, %v987_v8  ;;  %v1063_v16 = vunpack.c.l.b16 %v987_v8  ;;  %v1064_v17 = vunpack.c.h.b16 %v987_v8  ;;  %v3530_v29 = vrot.slane %v1351_v18, 7  ;;  %p3053_p5 = pnand %p3052_p4, %p3248_p3  ;;  %p3058_p10 = por %p3057_p9, %p3056_p7 }
 0x11b   : > { %v1007_v19 = vsel %vm3508_vm12, %v3515_v12, %v3517_v13  ;;  %vm1417_vm4 = vcmp.ne.s32.totalorder %v1413_v21, %v3470_v46  ;;  %v958_v38 = vpack.c.bf16 %v944_v53, %v944_v53  ;;  %vm1418_vm8 = vcmp.ne.s32.totalorder %v1414_v30, %v3475_v50 }
 0x11c   : > { %v992_v22 = vrot.slane %v991_v15, 4  ;;  %vm1067_vm15 = vcmp.ne.s32.totalorder %v1063_v16, %v3470_v46  ;;  %vm1068_vm0 = vcmp.ne.s32.totalorder %v1064_v17, %v3475_v50  ;;  %v1077_v23 = vunpack.c.l.b16 %v1007_v19  ;;  %vm3564_vm11 = vmpackc.low %vm1418_vm8, %vm1417_vm4  ;;  %p3054_p6 = pneg %p3053_p5 }
 0x11d   : > { %vm3526_vm1 = vmpackc.low %vm1068_vm0, %vm1067_vm15  ;;  %v1078_v28 = vunpack.c.h.b16 %v1007_v19  ;;  %v1356_v40 = vor.u32 %v1354_v20, %v3530_v29  ;;  %v3560_v44 = vpack.c.bf16 %v950_v24, %v949_v31  ;;  %v1011_v52 = vor.u32 %v1010_v26, %v3517_v13 }
 0x11e   : > { %v997_v32 = vsel %vm3508_vm12, %v992_v22, %v3493_v61  ;;  %vm1081_vm2 = vcmp.ne.s32.totalorder %v1077_v23, %v3470_v46  ;;  %v1126_v35 = vsel %vm3526_vm1, %v956_v58, 0  ;;  %v1944_v42 = vsel %vm3526_vm1, %v3501_v4, 0  ;;  %p3059_p11 = pnand %p3058_p10, %p3054_p6 }
 0x11f   : > { %v1070_v33 = vunpack.c.l.b16 %v997_v32  ;;  %v1071_v34 = vunpack.c.h.b16 %v997_v32  ;;  %vm1082_vm5 = vcmp.ne.s32.totalorder %v1078_v28, %v3475_v50  ;;  %v1210_v54 = vunpack.c.l.b16 %v1126_v35 }
 0x120   : > { %vm3551_vm7 = vmpackc.low %vm1082_vm5, %vm1081_vm2  ;;  %v1357_v55 = vsel %vm3547_vm6, %v3539_v25, %v1356_v40  ;;  %v1611_v56 = vsel %vm3526_vm1, %v958_v38, 0  ;;  %v1476_v62 = vsel %vm3564_vm11, %v3497_v3, 0  ;;  %v3590_v63 = vpack.c.bf16 %v949_v31, %v949_v31 }
 0x121   : > { %vm1074_vm9 = vcmp.ne.s32.totalorder %v1070_v33, %v3470_v46  ;;  %vm1075_vm10 = vcmp.ne.s32.totalorder %v1071_v34, %v3475_v50  ;;  %v1946_v48 = vsel %vm3551_vm7, %v3477_v51, 0  ;;  %v1420_v59 = vunpack.c.l.b16 %v1357_v55  ;;  %v2826_v33 = vld [vmem:[%s4254_s4 + $0x38] sm:$0xff]  ;;  %v2823_v34 = vld [vmem:[%s4254_s4 + $0x20] sm:$0xff] }
 0x122   : > { %vm3575_vm13 = vmpackc.low %vm1075_vm10, %vm1074_vm9  ;;  %v1421_v60 = vunpack.c.h.b16 %v1357_v55  ;;  %v1128_v0 = vsel %vm3551_vm7, %v958_v38, 0  ;;  %v3597_v5 = vpack.c.bf16 %v950_v24, %v950_v24  ;;  %v3603_v6 = vpack.c.bf16 %v3572_v49, %v3572_v49  ;;  %1721 = vmatpush.bf16.msrb.mxu3 %v2826_v33  ;;  %1580 = vmatpush.bf16.msrb.mxu2 %v2823_v34 }
 0x123   : > { %v1127_v58 = vsel %vm3575_vm13, %v3497_v3, 0  ;;  %v1945_v2 = vsel %vm3575_vm13, %v3472_v47, 0  ;;  %vm1424_vm14 = vcmp.ne.s32.totalorder %v1420_v59, %v3470_v46  ;;  %v1498_v9 = vunpack.c.l.b16 %v1476_v62 }
 0x124   : > { %v1211_v1 = vunpack.c.l.b16 %v1127_v58  ;;  %vm1425_vm15 = vcmp.ne.s32.totalorder %v1421_v60, %v3475_v50  ;;  %v3611_v10 = vunpack.c.l.b16 %v1611_v56  ;;  %v2143_v13 = vsel %vm3564_vm11, %v3472_v47, 0 }
 0x125   : > { %vm3607_vm0 = vmpackc.low %vm1425_vm15, %vm1424_vm14  ;;  %v1212_v14 = vunpack.c.l.b16 %v1128_v0  ;;  %v1012_v17 = vrot.slane %v1011_v52, 4  ;;  %v1612_v19 = vsel %vm3575_vm13, %v3603_v6, 0  ;;  %v824_v23 = vadd.s32 32, %v3450_v36 }
 0x126   : > { %2675 = vmatmul.msk.bf16.gmra.mxu2 %vm4266_vm3, %v3560_v44  ;;  %v1219_v3 = vpack.c.b16 %v1211_v1, %v1210_v54  ;;  %v1477_v15 = vsel %vm3607_vm0, %v958_v38, 0  ;;  %v2144_v16 = vsel %vm3607_vm0, %v3477_v51, 0  ;;  %v826_v26 = vadd.s32 48, %v3450_v36  ;;  %v2828_v54 = vld [vmem:[%s4254_s4 + $0x48] sm:$0xff] }
 0x127   : > { %v1499_v18 = vunpack.c.l.b16 %v1477_v15  ;;  %v1017_v22 = vsel %vm3508_vm12, %v1012_v17, %v3493_v61  ;;  %v823_v28 = vadd.s32 24, %v3450_v36  ;;  %v860_v38 = vand.u32 15, %v824_v23  ;;  %1778 = vmatpush.bf16.msrb.mxu0 %v2828_v54 }
 0x128   : > { %v1226_v20 = vshrl.u32 %v1219_v3, 16  ;;  %v1229_v21 = vshll.u32 %v1219_v3, 16  ;;  %v1084_v31 = vunpack.c.l.b16 %v1017_v22  ;;  %v1085_v24 = vunpack.c.h.b16 %v1017_v22 }
 0x129   : > { %v3630_v30 = vpack.c.b16 %v1499_v18, %v1498_v9  ;;  %v874_v40 = vand.u32 15, %v826_v26  ;;  %v853_v52 = vand.u32 15, %v823_v28  ;;  %v3645_v55 = vunpack.c.l.b16 %v1612_v19 }
 0x12a   : > { %v3632_v32 = vrot.slane %v1226_v20, 3  ;;  %v3640_v35 = vrot.slane %v1229_v21, 4  ;;  %vm1088_vm2 = vcmp.ne.s32.totalorder %v1084_v31, %v3470_v46  ;;  %vm1089_vm4 = vcmp.ne.s32.totalorder %v1085_v24, %v3475_v50 }
 0x12b   : > { %v1358_v56 = vrot.slane %v3530_v29, 4  ;;  %vm3650_vm5 = vmpackc.low %vm1089_vm4, %vm1088_vm2  ;;  %vm928_vm8 = vcmp.ge.s32.totalorder %v860_v38, 1  ;;  %vm930_vm9 = vcmp.ge.s32.totalorder %v874_v40, 1  ;;  %vm3656_vm10 = vcmp.le.s32.totalorder %v853_v52, 14 }
 0x12c   : > { %v1232_v59 = vor.u32 %v3640_v35, %v3632_v32  ;;  %v1129_v62 = vsel %vm3650_vm5, %v3603_v6, 0  ;;  %vm4265_vm14 = vsmask.f32 4352  ;;  %vm969_vm15 = vmpackc.low %vm928_vm8, %vm928_vm8  ;;  %v1514_v0 = vshrl.u32 %v3630_v30, 16 }
 0x12d   : > { %v3666_v29 = vsel %vm3547_vm6, %v1358_v56, %v3513_v11  ;;  %v1516_v1 = vshll.u32 %v3630_v30, 16  ;;  %v1213_v3 = vunpack.c.l.b16 %v1129_v62  ;;  %vm971_vm2 = vmpackc.low %vm930_vm9, %vm930_vm9  ;;  %v977_v9 = vsel %vm969_vm15, 65537, %v3138_v41 }
 0x12e   : > { %v1427_v15 = vunpack.c.l.b16 %v3666_v29  ;;  %v1428_v17 = vunpack.c.h.b16 %v3666_v29  ;;  %v979_v18 = vsel %vm971_vm2, 65537, %v3138_v41  ;;  %v1024_v19 = vshll.u32 %v977_v9, 16  ;;  %vm1326_vm4 = vmpackc.low %vm3656_vm10, %vm3656_vm10 }
 0x12f   : > { %v1028_v20 = vshrl.u32 %v977_v9, 16  ;;  %v3677_v21 = vrot.slane %v1516_v1, 1  ;;  %v1220_v22 = vpack.c.b16 %v1213_v3, %v1212_v14  ;;  %v1044_v23 = vshll.u32 %v979_v18, 16 }
 0x130   : > { %v1048_v26 = vshrl.u32 %v979_v18, 16  ;;  %v1334_v28 = vsel %vm1326_vm4, 65537, %v3138_v41  ;;  %v1026_v31 = vrot.slane %v1024_v19, 5  ;;  %vm3686_vm8 = vcmp.ne.s32.totalorder %v1427_v15, %v3470_v46 }
 0x131   : > { %v1030_v24 = vrot.slane %v1028_v20, 4  ;;  %v1369_v32 = vshrl.u32 %v1334_v28, 16  ;;  %v1372_v33 = vshll.u32 %v1334_v28, 16  ;;  %v1234_v34 = vshrl.u32 %v1220_v22, 16 }
 0x132   : > { %v1237_v35 = vshll.u32 %v1220_v22, 16  ;;  %v1046_v38 = vrot.slane %v1044_v23, 5  ;;  %v1050_v40 = vrot.slane %v1048_v26, 4  ;;  %v1027_v52 = vsel %vm3508_vm12, %v3515_v12, %v1026_v31 }
 0x133   : > { %v1031_v54 = vor.u32 %v1030_v24, %v1026_v31  ;;  %v3683_v56 = vrot.slane %v1369_v32, 7  ;;  %v1236_v60 = vrot.slane %v1234_v34, 3  ;;  %v1091_v9 = vunpack.c.l.b16 %v1027_v52 }
 0x134   : > { %v1239_v62 = vrot.slane %v1237_v35, 4  ;;  %v1047_v29 = vsel %vm3508_vm12, %v3515_v12, %v1046_v38  ;;  %v1051_v1 = vor.u32 %v1050_v40, %v1046_v38  ;;  %v1092_v18 = vunpack.c.h.b16 %v1027_v52 }
 0x135   : > { %v1032_v3 = vrot.slane %v1031_v54, 4  ;;  %v1105_v19 = vunpack.c.l.b16 %v1047_v29  ;;  %v1106_v23 = vunpack.c.h.b16 %v1047_v29  ;;  %v1374_v15 = vor.u32 %v1372_v33, %v3683_v56 }
 0x136   : > { %v3693_v20 = vor.u32 %v1239_v62, %v1236_v60  ;;  %v1052_v22 = vrot.slane %v1051_v1, 4  ;;  %vm1095_vm9 = vcmp.ne.s32.totalorder %v1091_v9, %v3470_v46  ;;  %vm1096_vm10 = vcmp.ne.s32.totalorder %v1092_v18, %v3475_v50  ;;  %v2827_v9 = vld [vmem:[%s4254_s4 + $0x40] sm:$0xff] }
 0x137   : > { %v1037_v26 = vsel %vm3508_vm12, %v1032_v3, %v3493_v61  ;;  %vm1109_vm15 = vcmp.ne.s32.totalorder %v1105_v19, %v3470_v46  ;;  %vm3707_vm2 = vmpackc.low %vm1096_vm10, %vm1095_vm9  ;;  %vm1110_vm4 = vcmp.ne.s32.totalorder %v1106_v23, %v3475_v50  ;;  %v1375_v40 = vsel %vm3547_vm6, %v3539_v25, %v1374_v15  ;;  %1779 = vmatpush.bf16.msrb.mxu0 %v2827_v9 }
 0x138   : > { %v1241_v28 = vsel %vm4265_vm14, %v1232_v59, %v3693_v20  ;;  %v1057_v31 = vsel %vm3508_vm12, %v1052_v22, %v3493_v61  ;;  %v1098_v32 = vunpack.c.l.b16 %v1037_v26  ;;  %v1099_v33 = vunpack.c.h.b16 %v1037_v26  ;;  %v2825_v61 = vld [vmem:[%s4254_s4 + $0x30] sm:$0xff]  ;;  %vm3721_vm10 = vmpackc.low %vm1110_vm4, %vm1109_vm15 }
 0x139   : > { %2684 = vmatmul.msk.bf16.vlgmr.msra.gmra.mxu1 %vm4266_vm3, %v1241_v28  ;;  %v1112_v34 = vunpack.c.l.b16 %v1057_v31  ;;  %v1113_v35 = vunpack.c.h.b16 %v1057_v31  ;;  %v1130_v59 = vsel %vm3707_vm2, %v3501_v4, 0  ;;  %v4312_v7 = vsel %vm3721_vm10, 4294967295, %v4311_v7  ;;  %1722 = vmatpush.bf16.msrb.mxu3 %v2825_v61 }
 0x13a   : > { %vm1102_vm12 = vcmp.ne.s32.totalorder %v1098_v32, %v3470_v46  ;;  %vm1103_vm9 = vcmp.ne.s32.totalorder %v1099_v33, %v3475_v50  ;;  %v1214_v38 = vunpack.c.l.b16 %v1130_v59  ;;  %v4313_v52 = vmov 0 }
 0x13b   : > { %vm3728_vm14 = vmpackc.low %vm1103_vm9, %vm1102_vm12  ;;  %vm1116_vm3 = vcmp.ne.s32.totalorder %v1112_v34, %v3470_v46  ;;  %vm1117_vm13 = vcmp.ne.s32.totalorder %v1113_v35, %v3475_v50  ;;  %v1132_v54 = vsel %vm3721_vm10, %v3477_v51, 0  ;;  %vm1432_vm15 = vcmp.ne.s32.totalorder %v1428_v17, %v3475_v50  ;;  %v2832_v17 = vld [vmem:[%s4254_s4 + $0x68] sm:$0xff] }
 0x13c   : > { %v4314_v52 = vsel %vm3728_vm14, 4294967295, %v4313_v52  ;;  %vm3738_vm4 = vmpackc.low %vm1117_vm13, %vm1116_vm3  ;;  %v4315_v60 = vmov 0  ;;  %v1131_v62 = vsel %vm3728_vm14, %v3472_v47, 0  ;;  %v1216_v29 = vunpack.c.l.b16 %v1132_v54  ;;  %2054 = vmatpush.bf16.msra.mxu2 %v2832_v17 }
 0x13d   : > { %v4316_v60 = vsel %vm3738_vm4, 4294967295, %v4315_v60  ;;  %v1434_v1 = vunpack.c.l.b16 %v1375_v40  ;;  %v1435_v3 = vunpack.c.h.b16 %v1375_v40  ;;  %v1133_v18 = vsel %vm3738_vm4, %v3590_v63, 0  ;;  %vm3756_vm3 = vmpackc.low %vm1432_vm15, %vm3686_vm8 }
 0x13e   : > { %v1215_v19 = vunpack.c.l.b16 %v1131_v62  ;;  %v1519_v23 = vor.u32 %v3677_v21, %v1514_v0  ;;  %v3765_v15 = vpack.c.bf16 %v3486_v57, %v3572_v49  ;;  %v1217_v26 = vunpack.c.l.b16 %v1133_v18 }
 0x13f   : > { %vm1438_vm13 = vcmp.ne.s32.totalorder %v1434_v1, %v3470_v46  ;;  %vm1439_vm12 = vcmp.ne.s32.totalorder %v1435_v3, %v3475_v50  ;;  %v1478_v14 = vsel %vm3756_vm3, %v3603_v6, 0  ;;  %vm4321_vm9 = vcmask 261120  }
 0x140   : > { %v1221_v28 = vpack.c.b16 %v1215_v19, %v1214_v38  ;;  %vm3772_vm8 = vmpackc.low %vm1439_vm12, %vm1438_vm13  ;;  %v1500_v0 = vunpack.c.l.b16 %v1478_v14  ;;  %2673 = vmatmul.msk.bf16.gmra.mxu0 %vm4321_vm9, %v3765_v15  ;;  %v1119_v57 = vunpack.c.l.b16 %v3515_v12  ;;  %v1120_v49 = vunpack.c.h.b16 %v3515_v12 }
 0x141   : > { %v1222_v21 = vpack.c.b16 %v1217_v26, %v1216_v29  ;;  %v1479_v31 = vsel %vm3772_vm8, %v3501_v4, 0  ;;  %v825_v32 = vadd.s32 40, %v3450_v36  ;;  %v1376_v33 = vrot.slane %v3683_v56, 4 }
 0x142   : > { %v1243_v34 = vshrl.u32 %v1221_v28, 16  ;;  %v1246_v35 = vshll.u32 %v1221_v28, 16  ;;  %v1501_v59 = vunpack.c.l.b16 %v1479_v31  ;;  %vm1123_vm15 = vcmp.ne.s32.totalorder %v1119_v57, %v3470_v46 }
 0x143   : > { %v1252_v61 = vshrl.u32 %v1222_v21, 16  ;;  %v1255_v38 = vshll.u32 %v1222_v21, 16  ;;  %vm1124_vm13 = vcmp.ne.s32.totalorder %v1120_v49, %v3475_v50  ;;  %v867_v40 = vand.u32 15, %v825_v32 }
 0x144   : > { %v1245_v12 = vrot.slane %v1243_v34, 3  ;;  %v1248_v54 = vrot.slane %v1246_v35, 4  ;;  %v3787_v62 = vpack.c.b16 %v1501_v59, %v1500_v0  ;;  %vm3789_vm12 = vmpackc.low %vm1124_vm13, %vm1123_vm15  ;;  %v4322_v29 = vmov 0 }
 0x145   : > { %v4323_v29 = vsel %vm3789_vm12, 4294967295, %v4322_v29  ;;  %v1384_v56 = vsel %vm3547_vm6, %v1376_v33, %v3513_v11  ;;  %v1254_v1 = vrot.slane %v1252_v61, 3  ;;  %v1257_v3 = vrot.slane %v1255_v38, 4  ;;  %v2830_v38 = vld [vmem:[%s4254_s4 + $0x58] sm:$0xff] }
 0x146   : > { %v1134_v9 = vsel %vm3789_vm12, %v3597_v5, 0  ;;  %vm937_vm9 = vcmp.le.s32.totalorder %v867_v40, 14  ;;  %v1249_v17 = vor.u32 %v1248_v54, %v1245_v12  ;;  %v1521_v18 = vshll.u32 %v3787_v62, 16  ;;  %1912 = vmatpush.bf16.msrb.mxu1 %v2830_v38 }
 0x147   : > { %v1218_v19 = vunpack.c.l.b16 %v1134_v9  ;;  %vm1328_vm4 = vmpackc.low %vm937_vm9, %vm937_vm9  ;;  %v1441_v26 = vunpack.c.l.b16 %v1384_v56  ;;  %v1258_v14 = vor.u32 %v1257_v3, %v1254_v1  ;;  %vm4276_vm15 = vsmask.f32 7424 }
 0x148   : > { %v1336_v28 = vsel %vm1328_vm4, 65537, %v3138_v41  ;;  %v1442_v0 = vunpack.c.h.b16 %v1384_v56  ;;  %v3801_v57 = vrot.slane %v1521_v18, 1  ;;  %vm4324_vm13 = vsmask.f32 4352 }
 0x149   : > { %v1250_v49 = vsel %vm4324_vm13, %v3693_v20, %v1249_v17  ;;  %v1223_v21 = vpack.c.b16 %v1218_v19, %v1218_v19  ;;  %v1387_v31 = vshrl.u32 %v1336_v28, 16  ;;  %vm4325_vm12 = vmmov %vm4324_vm13  ;;  %v1390_v33 = vshll.u32 %v1336_v28, 16  ;;  %v2834_v20 = vld [vmem:[%s4254_s4 + $0x78] sm:$0xff]  ;;  %v2829_v19 = vld [vmem:[%s4254_s4 + $0x50] sm:$0xff] }
 0x14a   : > { %v1259_v32 = vsel %vm4325_vm12, %v1249_v17, %v1258_v14  ;;  %vm1445_vm10 = vcmp.ne.s32.totalorder %v1441_v26, %v3470_v46  ;;  %vm1446_vm9 = vcmp.ne.s32.totalorder %v1442_v0, %v3475_v50  ;;  %vm4326_vm14 = vcmask 261120   ;;  %v2836_v26 = vld [vmem:[%s4254_s4 + $0x88] sm:$0xff]  ;;  %1913 = vmatpush.bf16.msrb.mxu1 %v2829_v19 }
 0x14b   : > { %2686 = vmatmul.msk.bf16.vlgmr.msra.gmra.mxu3 %vm4326_vm14, %v1259_v32  ;;  %v1524_v34 = vsel %vm4276_vm15, %v1519_v23, %v3801_v57  ;;  %vm4327_vm4 = vmmov %vm4326_vm14  ;;  %v1261_v35 = vshrl.u32 %v1223_v21, 16  ;;  %v1264_v59 = vshll.u32 %v1223_v21, 16  ;;  %v1389_v61 = vrot.slane %v1387_v31, 7  ;;  %2245 = vmatpush.bf16.msra.mxu0 %v2836_v26 }
 0x14c   : > { %2685 = vmatmul.msk.bf16.gmra.mxu1 %vm4327_vm4, %v1250_v49  ;;  %vm4328_vm12 = vmmov %vm4327_vm4  ;;  %v1613_v23 = vsel %vm3551_vm7, %v3501_v4, 0  ;;  %v1614_v12 = vsel %vm3650_vm5, %v3472_v47, 0  ;;  %2111 = vmatpush.bf16.msra.mxu3 %v2834_v20  ;;  %v1810_v3 = vsel %vm3564_vm11, %v3603_v6, 0  ;;  %v827_v18 = vadd.s32 56, %v3450_v36 }
 0x14d   : > { %2696 = vmatmul.msk.bf16.vlgmr.msrb.gmra.mxu2 %vm4328_vm12, %v1524_v34  ;;  %vm3819_vm13 = vmpackc.low %vm1446_vm9, %vm1445_vm10  ;;  %v1263_v54 = vrot.slane %v1261_v35, 3  ;;  %v1266_v56 = vrot.slane %v1264_v59, 4  ;;  %v1392_v1 = vor.u32 %v1390_v33, %v1389_v61  ;;  %v1635_v9 = vunpack.c.l.b16 %v1613_v23 }
 0x14e   : > { %v1636_v17 = vunpack.c.l.b16 %v1614_v12  ;;  %v1480_v6 = vsel %vm3819_vm13, %v3472_v47, 0  ;;  %v1642_v0 = vpack.c.b16 %v3645_v55, %v3611_v10  ;;  %v1394_v36 = vrot.slane %v1389_v61, 4  ;;  %vm4331_vm14 = vmmov %vm4327_vm4 }
 0x14f   : > { %v1393_v28 = vsel %vm3547_vm6, %v3539_v25, %v1392_v1  ;;  %v1267_v49 = vor.u32 %v1266_v56, %v1263_v54  ;;  %v1832_v32 = vunpack.c.l.b16 %v1810_v3  ;;  %v881_v34 = vand.u32 15, %v827_v18 }
 0x150   : > { %v1448_v21 = vunpack.c.l.b16 %v1393_v28  ;;  %v1449_v31 = vunpack.c.h.b16 %v1393_v28  ;;  %v1643_v33 = vpack.c.b16 %v1636_v17, %v1635_v9  ;;  %2720 = vmatmul.msk.bf16.vlgmr.msrb.gmra.mxu0 %vm4331_vm14, %v3765_v15  ;;  %v1402_v35 = vsel %vm3547_vm6, %v1394_v36, %v3513_v11 }
 0x151   : > { %v1502_v10 = vunpack.c.l.b16 %v1480_v6  ;;  %v1525_v55 = vshrl.u32 %v3787_v62, 16  ;;  %v4332_v59 = vmov 0  ;;  %v1648_v61 = vshrl.u32 %v1642_v0, 16 }
 0x152   : > { %vm1452_vm10 = vcmp.ne.s32.totalorder %v1448_v21, %v3470_v46  ;;  %vm1453_vm9 = vcmp.ne.s32.totalorder %v1449_v31, %v3475_v50  ;;  %vm939_vm12 = vcmp.le.s32.totalorder %v881_v34, 14  ;;  %v1455_v15 = vunpack.c.l.b16 %v1402_v35 }
 0x153   : > { %vm3855_vm4 = vmpackc.low %vm1453_vm9, %vm1452_vm10  ;;  %v1811_v20 = vsel %vm3607_vm0, %v3501_v4, 0  ;;  %vm4334_vm14 = vsmask.f32 4352  ;;  %v1651_v23 = vshll.u32 %v1642_v0, 16  ;;  %v1456_v62 = vunpack.c.h.b16 %v1402_v35 }
 0x154   : > { %v4333_v59 = vsel %vm3855_vm4, 4294967295, %v4332_v59  ;;  %v1268_v11 = vsel %vm4334_vm14, %v1258_v14, %v1267_v49  ;;  %v1481_v38 = vsel %vm3855_vm4, %v3477_v51, 0  ;;  %vm1330_vm15 = vmpackc.low %vm939_vm12, %vm939_vm12  ;;  %v1656_v54 = vshrl.u32 %v1643_v33, 16 }
 0x155   : > { %v1503_v12 = vunpack.c.l.b16 %v1481_v38  ;;  %v1338_v56 = vsel %vm1330_vm15, 65537, %v3138_v41  ;;  %v1812_v1 = vsel %vm3756_vm3, %v3472_v47, 0  ;;  %vm1459_vm10 = vcmp.ne.s32.totalorder %v1455_v15, %v3470_v46 }
 0x156   : > { %v1405_v3 = vshrl.u32 %v1338_v56, 16  ;;  %v1408_v9 = vshll.u32 %v1338_v56, 16  ;;  %vm1460_vm9 = vcmp.ne.s32.totalorder %v1456_v62, %v3475_v50  ;;  %v1659_v17 = vshll.u32 %v1643_v33, 16 }
 0x157   : > { %v3872_v14 = vpack.c.b16 %v1503_v12, %v1502_v10  ;;  %vm3874_vm14 = vmpackc.low %vm1460_vm9, %vm1459_vm10  ;;  %v1813_v41 = vsel %vm3772_vm8, %v3477_v51, 0  ;;  %v1833_v19 = vunpack.c.l.b16 %v1811_v20  ;;  %v1834_v6 = vunpack.c.l.b16 %v1812_v1 }
 0x158   : > { %v1407_v26 = vrot.slane %v1405_v3, 7  ;;  %v1482_v28 = vsel %vm3874_vm14, %v3590_v63, 0  ;;  %v1835_v0 = vunpack.c.l.b16 %v1813_v41  ;;  %v3888_v36 = vunpack.c.l.b16 %v1944_v42 }
 0x159   : > { %v1527_v49 = vor.u32 %v1525_v55, %v3801_v57  ;;  %v1529_v21 = vshll.u32 %v3872_v14, 16  ;;  %v1650_v31 = vrot.slane %v1648_v61, 3  ;;  %v1653_v33 = vrot.slane %v1651_v23, 4 }
 0x15a   : > { %v1410_v34 = vor.u32 %v1408_v9, %v1407_v26  ;;  %v1841_v35 = vpack.c.b16 %v1833_v19, %v1832_v32  ;;  %v3892_v10 = vpack.c.b16 %v1835_v0, %v1834_v6  ;;  %vm4337_vm15 = vcmask 261120   ;;  %v3928_v6 = vld [vmem:[%s3446_s30 + $0x48] sm:$0xff] }
 0x15b   : > { %2687 = vmatmul.msk.bf16.gmra.mxu3 %vm4337_vm15, %v1268_v11  ;;  %v1531_v15 = vrot.slane %v1529_v21, 1  ;;  %v1658_v20 = vrot.slane %v1656_v54, 3  ;;  %v1661_v38 = vrot.slane %v1659_v17, 4  ;;  %v1504_v27 = vunpack.c.l.b16 %v1482_v28  ;;  %vm4339_vm12 = vmmov %vm4337_vm15  ;;  %v2831_v54 = vld [vmem:[%s4254_s4 + $0x60] sm:$0xff] }
 0x15c   : > { %v1411_v4 = vsel %vm3547_vm6, %v3539_v25, %v1410_v34  ;;  %v1847_v42 = vshrl.u32 %v1841_v35, 16  ;;  %v1849_v57 = vshll.u32 %v1841_v35, 16  ;;  %v1854_v55 = vshll.u32 %v3892_v10, 16  ;;  %2055 = vmatpush.bf16.msra.mxu2 %v2831_v54 }
 0x15d   : > { %vm4338_vm1 = vsmask.f32 7424  ;;  %v1462_v23 = vunpack.c.l.b16 %v1411_v4  ;;  %v1463_v32 = vunpack.c.h.b16 %v1411_v4  ;;  %v1615_v11 = vsel %vm3707_vm2, %v3477_v51, 0 }
 0x15e   : > { %v1532_v61 = vsel %vm4338_vm1, %v1527_v49, %v1531_v15  ;;  %v1851_v62 = vrot.slane %v1849_v57, 1  ;;  %v1856_v12 = vrot.slane %v1854_v55, 1  ;;  %vm4340_vm10 = vnez %v4314_v52  ;;  %vm4343_vm1 = vmmov %vm4339_vm12 }
 0x15f   : > { %2697 = vmatmul.msk.bf16.gmra.mxu2 %vm4339_vm12, %v1532_v61  ;;  %v1616_v25 = vsel %vm4340_vm10, %v3590_v63, 0  ;;  %v1412_v37 = vrot.slane %v1407_v26, 4  ;;  %vm1466_vm6 = vcmp.ne.s32.totalorder %v1462_v23, %v3470_v46  ;;  %vm1467_vm9 = vcmp.ne.s32.totalorder %v1463_v32, %v3475_v50 }
 0x160   : > { %v1814_v56 = vsel %vm3819_vm13, %v3590_v63, 0  ;;  %v1815_v1 = vsel %vm3855_vm4, %v3597_v5, 0  ;;  %vm3918_vm15 = vmpackc.low %vm1467_vm9, %vm1466_vm6  ;;  %v1852_v9 = vor.u32 %v1851_v62, %v1847_v42  ;;  %v1637_v17 = vunpack.c.l.b16 %v1615_v11  ;;  %2721 = vmatmul.msk.bf16.gmra.mxu0 %vm4343_vm1, %v3463_v43 }
 0x161   : > { %v1469_v41 = vunpack.c.l.b16 %v1412_v37  ;;  %v1470_v19 = vunpack.c.h.b16 %v1412_v37  ;;  %v1483_v26 = vsel %vm3918_vm15, %v3597_v5, 0  ;;  %v1638_v28 = vunpack.c.l.b16 %v1616_v25  ;;  %vm4346_vm9 = vmmov %vm4343_vm1  ;;  %v3970_v25 = vld [vmem:[%s3446_s30 + $0x50] sm:$0xff] }
 0x162   : > { %v1836_v0 = vunpack.c.l.b16 %v1814_v56  ;;  %v1837_v49 = vunpack.c.l.b16 %v1815_v1  ;;  %v1967_v21 = vunpack.c.l.b16 %v1945_v2  ;;  %v1654_v34 = vor.u32 %v1653_v33, %v1650_v31  ;;  %vm4350_vm7 = vmmov %vm4346_vm9  ;;  %v2833_v56 = vld [vmem:[%s4254_s4 + $0x70] sm:$0xff] }
 0x163   : > { %v1505_v35 = vunpack.c.l.b16 %v1483_v26  ;;  %vm4345_vm6 = vsmask.f32 7424  ;;  %v3935_v42 = vor.u32 %v1661_v38, %v1658_v20  ;;  %v1533_v57 = vshrl.u32 %v3872_v14, 16  ;;  %2112 = vmatpush.bf16.msra.mxu3 %v2833_v56 }
 0x164   : > { %v1857_v4 = vsel %vm4345_vm6, %v1852_v9, %v1856_v12  ;;  %vm1473_vm1 = vcmp.ne.s32.totalorder %v1469_v41, %v3470_v46  ;;  %vm1474_vm4 = vcmp.ne.s32.totalorder %v1470_v19, %v3475_v50  ;;  %v3945_v53 = vpack.c.bf16 %v3928_v6, %v3928_v6 }
 0x165   : > { %2732 = vmatmul.msk.bf16.vlgmr.msrb.gmra.mxu1 %vm4346_vm9, %v1857_v4  ;;  %v3941_v55 = vpack.c.b16 %v1505_v35, %v1504_v27  ;;  %v3947_v2 = vpack.c.b16 %v1837_v49, %v1836_v0  ;;  %v1644_v31 = vpack.c.b16 %v1638_v28, %v1637_v17  ;;  %vm3949_vm12 = vmpackc.low %vm1474_vm4, %vm1473_vm1  ;;  %v1968_v46 = vunpack.c.l.b16 %v1946_v48 }
 0x166   : > { %v1858_v14 = vshrl.u32 %v3892_v10, 16  ;;  %vm4349_vm6 = vsmask.f32 4352  ;;  %v1535_v38 = vor.u32 %v1533_v57, %v1531_v15  ;;  %v1947_v27 = vsel %vm3650_vm5, %v3590_v63, 0  ;;  %vm4352_vm4 = vmmov %vm4350_vm7 }
 0x167   : > { %v1537_v50 = vshll.u32 %v3941_v55, 16  ;;  %v1663_v20 = vsel %vm4349_vm6, %v1654_v34, %v3935_v42  ;;  %v1975_v61 = vpack.c.b16 %v1967_v21, %v3888_v36  ;;  %v1484_v39 = vsel %vm3949_vm12, %v3945_v53, 0  ;;  %v2835_v34 = vld [vmem:[%s4254_s4 + $0x80] sm:$0xff] }
 0x168   : > { %v1862_v48 = vshll.u32 %v3947_v2, 16  ;;  %v1969_v32 = vunpack.c.l.b16 %v1947_v27  ;;  %v1665_v11 = vshrl.u32 %v1644_v31, 16  ;;  %v1668_v15 = vshll.u32 %v1644_v31, 16  ;;  %2246 = vmatpush.bf16.msra.mxu0 %v2835_v34 }
 0x169   : > { %v1539_v23 = vrot.slane %v1537_v50, 1  ;;  %v1981_v10 = vshrl.u32 %v1975_v61, 16  ;;  %v1984_v62 = vshll.u32 %v1975_v61, 16  ;;  %v1860_v37 = vor.u32 %v1858_v14, %v1856_v12 }
 0x16a   : > { %v1976_v54 = vpack.c.b16 %v1969_v32, %v1968_v46  ;;  %vm4351_vm5 = vsmask.f32 7424  ;;  %v1506_v36 = vunpack.c.l.b16 %v1484_v39  ;;  %v1864_v17 = vrot.slane %v1862_v48, 1 }
 0x16b   : > { %2708 = vmatmul.msk.bf16.vlgmr.msrb.gmra.mxu3 %vm4350_vm7, %v1663_v20  ;;  %v1540_v58 = vsel %vm4351_vm5, %v1535_v38, %v1539_v23  ;;  %v1983_v1 = vrot.slane %v1981_v10, 3  ;;  %v1986_v9 = vrot.slane %v1984_v62, 4  ;;  %v3979_v26 = vpack.c.bf16 %v3970_v25, %v3970_v25  ;;  %vm4355_vm6 = vmmov %vm4351_vm5 }
 0x16c   : > { %v1989_v41 = vshrl.u32 %v1976_v54, 16  ;;  %v1992_v19 = vshll.u32 %v1976_v54, 16  ;;  %v1667_v12 = vrot.slane %v1665_v11, 3  ;;  %v1816_v28 = vsel %vm3874_vm14, %v3945_v53, 0  ;;  %vm4356_vm7 = vmmov %vm4352_vm4 }
 0x16d   : > { %v1987_v0 = vor.u32 %v1986_v9, %v1983_v1  ;;  %v1817_v35 = vsel %vm3918_vm15, %v3979_v26, 0  ;;  %v1670_v4 = vrot.slane %v1668_v15, 4  ;;  %v1511_v57 = vpack.c.b16 %v1506_v36, %v1506_v36 }
 0x16e   : > { %v1991_v49 = vrot.slane %v1989_v41, 3  ;;  %v1994_v21 = vrot.slane %v1992_v19, 4  ;;  %vm4353_vm9 = vnez %v4312_v7  ;;  %vm4354_vm1 = vnez %v4316_v60  ;;  %v4015_v19 = vld [vmem:[%s3446_s30 + $0x58] sm:$0xff]  ;;  %v4080_v7 = vld [vmem:[%s3446_s30 + $0x60] sm:$0xff] }
 0x16f   : > { %2698 = vmatmul.msk.bf16.gmra.mxu2 %vm4352_vm4, %v1540_v58  ;;  %v1617_v31 = vsel %vm4353_vm9, %v3597_v5, 0  ;;  %v1618_v46 = vsel %vm4354_vm1, %v3945_v53, 0  ;;  %v1865_v50 = vsel %vm4355_vm6, %v1860_v37, %v1864_v17  ;;  %v1838_v20 = vunpack.c.l.b16 %v1816_v28 }
 0x170   : > { %v1995_v14 = vor.u32 %v1994_v21, %v1991_v49  ;;  %v1839_v38 = vunpack.c.l.b16 %v1817_v35  ;;  %2722 = vmatmul.msk.bf16.gmra.mxu0 %vm4356_vm7, %v3560_v44  ;;  %vm4357_vm5 = vsmask.f32 4352  ;;  %v1541_v61 = vshrl.u32 %v3941_v55, 16 }
 0x171   : > { %v1545_v39 = vshll.u32 %v1511_v57, 16  ;;  %v1639_v48 = vunpack.c.l.b16 %v1617_v31  ;;  %v1640_v32 = vunpack.c.l.b16 %v1618_v46  ;;  %v1671_v11 = vor.u32 %v1670_v4, %v1667_v12  ;;  %vm4358_vm6 = vmmov %vm4357_vm5 }
 0x172   : > { %v4001_v27 = vsel %vm4357_vm5, %v1987_v0, %v1995_v14  ;;  %v1844_v10 = vpack.c.b16 %v1839_v38, %v1838_v20  ;;  %v1948_v62 = vsel %vm3707_vm2, %v3597_v5, 0  ;;  %v1949_v15 = vsel %vm4340_vm10, %v3945_v53, 0  ;;  %vm4359_vm2 = vmmov %vm4352_vm4 }
 0x173   : > { %v1970_v37 = vunpack.c.l.b16 %v1948_v62  ;;  %v1971_v54 = vunpack.c.l.b16 %v1949_v15  ;;  %v1543_v58 = vor.u32 %v1541_v61, %v1539_v23  ;;  %v1547_v55 = vrot.slane %v1545_v39, 1  ;;  %vm4361_vm7 = vmmov %vm4359_vm2 }
 0x174   : > { %v1645_v36 = vpack.c.b16 %v1640_v32, %v1639_v48  ;;  %v1672_v56 = vsel %vm4358_vm6, %v3935_v42, %v1671_v11  ;;  %v1866_v1 = vshrl.u32 %v3947_v2, 16  ;;  %v1870_v9 = vshll.u32 %v1844_v10, 16  ;;  %vm4364_vm11 = vmmov %vm4358_vm6 }
 0x175   : > { %2733 = vmatmul.msk.bf16.gmra.mxu1 %vm4352_vm4, %v1865_v50  ;;  %v1977_v41 = vpack.c.b16 %v1971_v54, %v1970_v37  ;;  %v4019_v24 = vpack.c.bf16 %v4015_v19, %v4015_v19  ;;  %vm4360_vm10 = vsmask.f32 7424  ;;  %v4025_v34 = vpack.c.bf16 %v3970_v25, %v3928_v6  ;;  %vm4365_vm6 = vmmov %vm4359_vm2 }
 0x176   : > { %v1548_v23 = vsel %vm4360_vm10, %v1543_v58, %v1547_v55  ;;  %v1674_v28 = vshrl.u32 %v1645_v36, 16  ;;  %v1677_v0 = vshll.u32 %v1645_v36, 16  ;;  %v1868_v49 = vor.u32 %v1866_v1, %v1864_v17  ;;  %vm4362_vm5 = vmmov %vm4360_vm10 }
 0x177   : > { %v1998_v52 = vshrl.u32 %v1977_v41, 16  ;;  %v2001_v12 = vshll.u32 %v1977_v41, 16  ;;  %v1872_v42 = vrot.slane %v1870_v9, 1  ;;  %v1818_v35 = vsel %vm3949_vm12, %v4019_v24, 0  ;;  %vm4366_vm0 = vmmov %vm4359_vm2 }
 0x178   : > { %v2165_v4 = vunpack.c.l.b16 %v2143_v13  ;;  %v2166_v17 = vunpack.c.l.b16 %v2144_v16  ;;  %v1676_v6 = vrot.slane %v1674_v28, 3  ;;  %v1679_v25 = vrot.slane %v1677_v0, 4  ;;  %vm4370_vm10 = vmmov %vm4366_vm0 }
 0x179   : > { %v2000_v21 = vrot.slane %v1998_v52, 3  ;;  %v2003_v2 = vrot.slane %v2001_v12, 4  ;;  %v1873_v31 = vsel %vm4362_vm5, %v1868_v49, %v1872_v42  ;;  %vm4363_vm4 = vnez %v4323_v29 }
 0x17a   : > { %v1619_v45 = vsel %vm4363_vm4, %v3979_v26, 0  ;;  %v1840_v13 = vunpack.c.l.b16 %v1818_v35  ;;  %v2145_v51 = vsel %vm3756_vm3, %v3590_v63, 0  ;;  %v2146_v8 = vsel %vm3772_vm8, %v3597_v5, 0  ;;  %vm4368_vm3 = vmmov %vm4362_vm5 }
 0x17b   : > { %2709 = vmatmul.msk.bf16.gmra.mxu3 %vm4359_vm2, %v1672_v56  ;;  %v4039_v57 = vor.u32 %v2003_v2, %v2000_v21  ;;  %v2167_v16 = vunpack.c.l.b16 %v2145_v51  ;;  %v2168_v46 = vunpack.c.l.b16 %v2146_v8  ;;  %v2174_v50 = vpack.c.b16 %v2166_v17, %v2165_v4  ;;  %vm4367_vm2 = vmmov %vm4364_vm11 }
 0x17c   : > { %v1680_v20 = vor.u32 %v1679_v25, %v1676_v6  ;;  %v1641_v38 = vunpack.c.l.b16 %v1619_v45  ;;  %v1874_v15 = vshrl.u32 %v1844_v10, 16  ;;  %vm4369_vm8 = vmmov %vm4366_vm0  ;;  %v2147_v10 = vsel %vm3819_vm13, %v3945_v53, 0 }
 0x17d   : > { %v2005_v47 = vsel %vm4364_vm11, %v1995_v14, %v4039_v57  ;;  %v1845_v14 = vpack.c.b16 %v1840_v13, %v1840_v13  ;;  %v2175_v61 = vpack.c.b16 %v2168_v46, %v2167_v16  ;;  %v2182_v39 = vshll.u32 %v2174_v50, 16  ;;  %vm4372_vm5 = vmmov %vm4366_vm0 }
 0x17e   : > { %v2180_v48 = vshrl.u32 %v2174_v50, 16  ;;  %v1681_v22 = vsel %vm4367_vm2, %v1671_v11, %v1680_v20  ;;  %v1646_v63 = vpack.c.b16 %v1641_v38, %v1641_v38  ;;  %v1876_v36 = vor.u32 %v1874_v15, %v1872_v42  ;;  %vm4375_vm13 = vmmov %vm4367_vm2 }
 0x17f   : > { %2699 = vmatmul.msk.bf16.gmra.mxu2 %vm4361_vm7, %v1548_v23  ;;  %v2184_v32 = vrot.slane %v2182_v39, 1  ;;  %v2187_v62 = vshll.u32 %v2175_v61, 16  ;;  %v1878_v37 = vshll.u32 %v1845_v14, 16  ;;  %vm4371_vm7 = vmmov %vm4368_vm3  ;;  %vm4373_vm11 = vnez %v4333_v59  ;;  %v955_v39 = vld [vmem:[%s3446_s30 + $0x68] sm:$0xff] }
 0x180   : > { %2723 = vmatmul.msk.bf16.gmra.mxu0 %vm4365_vm6, %v4025_v34  ;;  %v1683_v58 = vshrl.u32 %v1646_v63, 16  ;;  %v1686_v55 = vshll.u32 %v1646_v63, 16  ;;  %v2148_v41 = vsel %vm4373_vm11, %v3979_v26, 0  ;;  %v2169_v52 = vunpack.c.l.b16 %v2147_v10  ;;  %vm4374_vm6 = vmmov %vm4366_vm0 }
 0x181   : > { %v2185_v30 = vor.u32 %v2184_v32, %v2180_v48  ;;  %v2189_v5 = vrot.slane %v2187_v62, 1  ;;  %v1880_v56 = vrot.slane %v1878_v37, 1  ;;  %v2170_v12 = vunpack.c.l.b16 %v2148_v41  ;;  %vm4377_vm2 = vmmov %vm4372_vm5 }
 0x182   : > { %v1685_v1 = vrot.slane %v1683_v58, 3  ;;  %v1688_v9 = vrot.slane %v1686_v55, 4  ;;  %v1950_v23 = vsel %vm4353_vm9, %v3979_v26, 0  ;;  %v1951_v28 = vsel %vm4354_vm1, %v4019_v24, 0  ;;  %vm4378_vm9 = vmmov %vm4377_vm2 }
 0x183   : > { %v2190_v54 = vsel %vm4368_vm3, %v2185_v30, %v2189_v5  ;;  %v1881_v11 = vsel %vm4371_vm7, %v1876_v36, %v1880_v56  ;;  %v2176_v40 = vpack.c.b16 %v2170_v12, %v2169_v52  ;;  %v2191_v53 = vshrl.u32 %v2175_v61, 16  ;;  %vm4379_vm1 = vmmov %vm4377_vm2 }
 0x184   : > { %v1972_v49 = vunpack.c.l.b16 %v1950_v23  ;;  %v1973_v59 = vunpack.c.l.b16 %v1951_v28  ;;  %v1943_v17 = vpack.c.bf16 %v4080_v7, %v4080_v7  ;;  %v2149_v6 = vsel %vm3874_vm14, %v4019_v24, 0  ;;  %vm4389_vm11 = vmmov %vm4379_vm1 }
 0x185   : > { %2734 = vmatmul.msk.bf16.gmra.mxu1 %vm4366_vm0, %v1873_v31  ;;  %v2195_v0 = vshll.u32 %v2176_v40, 16  ;;  %v2193_v21 = vor.u32 %v2191_v53, %v2189_v5  ;;  %vm4376_vm0 = vmmov %vm4368_vm3  ;;  %v2171_v31 = vunpack.c.l.b16 %v2149_v6  ;;  %v2199_v16 = vshrl.u32 %v2176_v40, 16 }
 0x186   : > { %v1978_v4 = vpack.c.b16 %v1973_v59, %v1972_v49  ;;  %v2150_v25 = vsel %vm3918_vm15, %v1943_v17, 0  ;;  %vm4380_vm14 = vmmov %vm4376_vm0  ;;  %v2142_v62 = vpack.c.bf16 %v955_v39, %v955_v39  ;;  %v2085_v49 = vpack.c.bf16 %v4080_v7, %v4015_v19 }
 0x187   : > { %v2197_v2 = vrot.slane %v2195_v0, 1  ;;  %v2172_v45 = vunpack.c.l.b16 %v2150_v25  ;;  %vm4381_vm15 = vmmov %vm4379_vm1 }
 0x188   : > { %v2007_v60 = vshrl.u32 %v1978_v4, 16  ;;  %v2010_v26 = vshll.u32 %v1978_v4, 16  ;;  %vm4382_vm3 = vmmov %vm4375_vm13  ;;  %v2151_v63 = vsel %vm3949_vm12, %v2142_v62, 0 }
 0x189   : > { %v2198_v35 = vsel %vm4376_vm0, %v2193_v21, %v2197_v2  ;;  %v2177_v8 = vpack.c.b16 %v2172_v45, %v2171_v31  ;;  %v2201_v14 = vor.u32 %v2199_v16, %v2197_v2  ;;  %v2173_v15 = vunpack.c.l.b16 %v2151_v63  ;;  %vm4386_vm7 = vmmov %vm4382_vm3 }
 0x18a   : > { %v2009_v13 = vrot.slane %v2007_v60, 3  ;;  %v2012_v51 = vrot.slane %v2010_v26, 4  ;;  %vm4388_vm12 = vmmov %vm4376_vm0  ;;  %v2838_v26 = vld [vmem:[%s4257_s7 + $0x8] sm:$0xff] }
 0x18b   : > { %2710 = vmatmul.msk.bf16.gmra.mxu3 %vm4369_vm8, %v1681_v22  ;;  %v2203_v46 = vshll.u32 %v2177_v8, 16  ;;  %vm4383_vm8 = vmmov %vm4379_vm1  ;;  %v2178_v5 = vpack.c.b16 %v2173_v15, %v2173_v15  ;;  %2346 = vmatpush.bf16.msra.mxu1 %v2838_v26 }
 0x18c   : > { %v2013_v50 = vor.u32 %v2012_v51, %v2009_v13  ;;  %vm4392_vm0 = vmmov %vm4379_vm1 }
 0x18d   : > { %v2205_v18 = vrot.slane %v2203_v46, 1 }
 0x18e   : > { %v2014_v61 = vsel %vm4382_vm3, %v4039_v57, %v2013_v50  ;;  %v2207_v57 = vshrl.u32 %v2177_v8, 16 }
 0x18f   : > { %2744 = vmatmul.msk.bf16.vlgmr.msra.gmra.mxu2 %vm4370_vm10, %v4001_v27  ;;  %v1689_v27 = vor.u32 %v1688_v9, %v1685_v1  ;;  %v2206_v3 = vsel %vm4380_vm14, %v2201_v14, %v2205_v18  ;;  %vm4385_vm10 = vmmov %vm4379_vm1 }
 0x190   : > { %2768 = vmatmul.msk.bf16.vlgmr.msra.gmra.mxu0 %vm4372_vm5, %v2190_v54  ;;  %v2211_v54 = vshll.u32 %v2178_v5, 16  ;;  %v2209_v55 = vor.u32 %v2207_v57, %v2205_v18  ;;  %vm4387_vm5 = vmmov %vm4379_vm1 }
 0x191   : > { %v1690_v42 = vsel %vm4375_vm13, %v1680_v20, %v1689_v27  ;;  %vm4391_vm13 = vmmov %vm4379_vm1 }
 0x192   : > { %v2213_v36 = vrot.slane %v2211_v54, 1 }
 0x193   : > { %v1181_v24 = vpop.f32.mrf.mxu0 }
 0x194   : > { %v2214_v9 = vsel %vm4388_vm12, %v2209_v55, %v2213_v36 }
 0x195   : > { %2735 = vmatmul.msk.bf16.gmra.mxu1 %vm4374_vm6, %v1881_v11  ;;  %vm4390_vm6 = vmmov %vm4379_vm1 }
 0x199   : > { %v1191_v20 = vpop.f32.mrf.mxu2 }
 0x19b   : > { %2711 = vmatmul.msk.bf16.gmra.mxu3 %vm4377_vm2, %v1690_v42  ;;  %vm4393_vm2 = vmmov %vm4392_vm0 }
 0x19f   : > { %2745 = vmatmul.msk.bf16.gmra.mxu2 %vm4378_vm9, %v2005_v47  ;;  %v1952_v47 = vsel %vm4363_vm4, %v1943_v17, 0  ;;  %vm4384_vm4 = vmmov %vm4379_vm1 }
 0x1a0   : > { %2769 = vmatmul.msk.bf16.gmra.mxu0 %vm4379_vm1, %v2198_v35  ;;  %v1974_v38 = vunpack.c.l.b16 %v1952_v47  ;;  %vm4394_vm9 = vmmov %vm4392_vm0 }
 0x1a1   : > { %v1193_v22 = vpop.f32.mrf.mxu2  ;;  %vm4395_vm1 = vmmov %vm4392_vm0 }
 0x1a2   : > { %v1979_v29 = vpack.c.b16 %v1974_v38, %v1974_v38 }
 0x1a4   : > { %v2016_v48 = vshrl.u32 %v1979_v29, 16  ;;  %v2019_v32 = vshll.u32 %v1979_v29, 16 }
 0x1a6   : > { %v2018_v37 = vrot.slane %v2016_v48, 3  ;;  %v2021_v30 = vrot.slane %v2019_v32, 4 }
 0x1a8   : > { %v2022_v58 = vor.u32 %v2021_v30, %v2018_v37 }
 0x1a9   : > { %v1196_v1 = vpop.f32.mrf.mxu2 }
 0x1aa   : > { %v2023_v56 = vsel %vm4386_vm7, %v2013_v50, %v2022_v58 }
 0x1ab   : > { %2756 = vmatmul.msk.bf16.vlgmr.msra.gmra.mxu3 %vm4381_vm15, %v3463_v43  ;;  %v4103_v43 = vpop.f32.mrf.mxu0 }
 0x1af   : > { %2746 = vmatmul.msk.bf16.gmra.mxu2 %vm4383_vm8, %v2014_v61 }
 0x1b0   : > { %2770 = vmatmul.msk.bf16.gmra.mxu0 %vm4384_vm4, %v2206_v3 }
 0x1b1   : > { %v1198_v11 = vpop.f32.mrf.mxu2 }
 0x1b6   : > { %v1302_v41 = vpop.f32.mrf.mxu1 }
 0x1b7   : > { %v1303_v52 = vadd.f32 %v1302_v41, %v1181_v24  ;;  %v2837_v24 = vld [vmem:[%s4257_s7] sm:$0xff] }
 0x1b8   : > { %2347 = vmatpush.bf16.msra.mxu1 %v2837_v24 }
 0x1bb   : > { %2757 = vmatmul.msk.bf16.gmra.mxu3 %vm4385_vm10, %v3560_v44 }
 0x1bd   : > { %v1186_v33 = vpop.f32.mrf.mxu0 }
 0x1be   : > { %v1304_v40 = vpop.f32.mrf.mxu1 }
 0x1bf   : > { %2747 = vmatmul.msk.bf16.gmra.mxu2 %vm4387_vm5, %v2023_v56 }
 0x1c0   : > { %2771 = vmatmul.msk.bf16.gmra.mxu0 %vm4389_vm11, %v2214_v9 }
 0x1c5   : > { %v4111_v10 = vpop.f32.mrf.mxu0 }
 0x1c9   : > { %v1307_v21 = vpop.f32.mrf.mxu1 }
 0x1ca   : > { %v1308_v2 = vadd.f32 %v1307_v21, %v1186_v33  ;;  %v4148_v21 = vld [vmem:[%s4255_s5] ss:$0 sm:$0xff] }
 0x1cb   : > { %2758 = vmatmul.msk.bf16.gmra.mxu3 %vm4390_vm6, %v4025_v34 }
 0x1cd   : > { %v1781_v28 = vpop.f32.mrf.mxu0 }
 0x1ce   : > { %v1312_v12 = vpop.f32.mrf.mxu3 }
 0x1cf   : > { %v1313_v44 = vadd.f32 %v1312_v12, %v1191_v20 }
 0x1d0   : > { %v1582_v27 = vpop.f32.mrf.mxu2 }
 0x1d1   : > { %v1602_v23 = vadd.f32 %v1582_v27, %v1303_v52  ;;  %v1309_v62 = vpop.f32.mrf.mxu1 }
 0x1d5   : > { %v1783_v42 = vpop.f32.mrf.mxu0 }
 0x1d6   : > { %v1314_v53 = vpop.f32.mrf.mxu3 }
 0x1d7   : > { %v4115_v0 = vadd.f32 %v1314_v53, %v1193_v22 }
 0x1d8   : > { %v1584_v59 = vpop.f32.mrf.mxu2 }
 0x1db   : > { %2759 = vmatmul.msk.bf16.gmra.mxu3 %vm4391_vm13, %v2085_v49 }
 0x1dd   : > { %v1786_v6 = vpop.f32.mrf.mxu0 }
 0x1de   : > { %v1317_v34 = vpop.f32.mrf.mxu3 }
 0x1df   : > { %v1318_v35 = vadd.f32 %v1317_v34, %v1196_v1  ;;  %v1305_v1 = vadd.f32 %v1304_v40, %v4103_v43  ;;  %v1310_v40 = vadd.f32 %v1309_v62, %v4111_v10 }
 0x1e1   : > { %v1603_v33 = vadd.f32 %v1584_v59, %v1305_v1 }
 0x1e2   : > { %v1587_v4 = vpop.f32.mrf.mxu2  ;;  %v1915_v37 = vpop.f32.mrf.mxu1 }
 0x1e3   : > { %v1604_v60 = vadd.f32 %v1587_v4, %v1308_v2 }
 0x1e5   : > { %v4125_v45 = vpop.f32.mrf.mxu0 }
 0x1e6   : > { %v1319_v17 = vpop.f32.mrf.mxu3 }
 0x1e7   : > { %v4123_v25 = vadd.f32 %v1319_v17, %v1198_v11 }
 0x1ea   : > { %v1589_v19 = vpop.f32.mrf.mxu2  ;;  %v1917_v55 = vpop.f32.mrf.mxu1 }
 0x1ed   : > { %v1791_v46 = vpop.f32.mrf.mxu0 }
 0x1ee   : > { %v1724_v7 = vpop.f32.mrf.mxu3 }
 0x1ef   : > { %v1744_v31 = vadd.f32 %v1724_v7, %v1602_v23 }
 0x1f1   : > { %v1801_v13 = vadd.f32 %v1781_v28, %v1744_v31 }
 0x1f2   : > { %v1592_v51 = vpop.f32.mrf.mxu2  ;;  %v1920_v12 = vpop.f32.mrf.mxu1 }
 0x1f3   : > { %v1606_v47 = vadd.f32 %v1592_v51, %v1313_v44  ;;  %v1935_v9 = vadd.f32 %v1915_v37, %v1801_v13 }
 0x1f5   : > { %v4132_v3 = vpop.f32.mrf.mxu0 }
 0x1f6   : > { %v1726_v8 = vpop.f32.mrf.mxu3 }
 0x1f7   : > { %v1745_v11 = vadd.f32 %v1726_v8, %v1603_v33 }
 0x1f9   : > { %v1802_v27 = vadd.f32 %v1783_v42, %v1745_v11  ;;  %v4155_v42 = vld [vmem:[%s4256_s6] ss:$0 sm:$0xff] }
 0x1fa   : > { %v4127_v16 = vpop.f32.mrf.mxu2  ;;  %v1922_v4 = vpop.f32.mrf.mxu1 }
 0x1fb   : > { %v1936_v53 = vadd.f32 %v1917_v55, %v1802_v27  ;;  %v1607_v37 = vadd.f32 %v4127_v16, %v4115_v0 }
 0x1fd   : > { %v1796_v39 = vpop.f32.mrf.mxu0 }
 0x1fe   : > { %v1729_v50 = vpop.f32.mrf.mxu3 }
 0x1ff   : > { %v1746_v20 = vadd.f32 %v1729_v50, %v1604_v60  ;;  %v1605_v60 = vadd.f32 %v1589_v19, %v1310_v40 }
 0x201   : > { %v1803_v38 = vadd.f32 %v1786_v6, %v1746_v20 }
 0x202   : > { %v1597_v14 = vpop.f32.mrf.mxu2  ;;  %v1925_v19 = vpop.f32.mrf.mxu1 }
 0x203   : > { %v1608_v18 = vadd.f32 %v1597_v14, %v1318_v35  ;;  %v1937_v6 = vadd.f32 %v1920_v12, %v1803_v38 }
 0x205   : > { %v4138_v15 = vpop.f32.mrf.mxu0 }
 0x206   : > { %v1731_v61 = vpop.f32.mrf.mxu3 }
 0x207   : > { %v1747_v7 = vadd.f32 %v1731_v61, %v1605_v60 }
 0x209   : > { %v1804_v8 = vadd.f32 %v4125_v45, %v1747_v7 }
 0x20a   : > { %v4136_v22 = vpop.f32.mrf.mxu2 }
 0x20b   : > { %v1938_v24 = vadd.f32 %v1922_v4, %v1804_v8 }
 0x20d   : > { %v2248_v58 = vpop.f32.mrf.mxu0 }
 0x20e   : > { %v1734_v29 = vpop.f32.mrf.mxu3 }
 0x20f   : > { %v1748_v48 = vadd.f32 %v1734_v29, %v1606_v47 }
 0x211   : > { %v4134_v32 = vadd.f32 %v1791_v46, %v1748_v48 }
 0x212   : > { %v2057_v30 = vpop.f32.mrf.mxu2 }
 0x213   : > { %v2077_v52 = vadd.f32 %v2057_v30, %v1935_v9 }
 0x215   : > { %v2250_v41 = vpop.f32.mrf.mxu0 }
 0x216   : > { %v1736_v63 = vpop.f32.mrf.mxu3 }
 0x21a   : > { %v2059_v36 = vpop.f32.mrf.mxu2 }
 0x21b   : > { %v2078_v2 = vadd.f32 %v2059_v36, %v1936_v53  ;;  %v1927_v36 = vpop.f32.mrf.mxu1 }
 0x21d   : > { %v2253_v43 = vpop.f32.mrf.mxu0 }
 0x21e   : > { %v1739_v5 = vpop.f32.mrf.mxu3 }
 0x21f   : > { %v1750_v57 = vadd.f32 %v1739_v5, %v1608_v18  ;;  %v1939_v5 = vadd.f32 %v1925_v19, %v4134_v32 }
 0x221   : > { %v4140_v54 = vadd.f32 %v1796_v39, %v1750_v57  ;;  %v1749_v57 = vadd.f32 %v1736_v63, %v1607_v37 }
 0x222   : > { %v2062_v28 = vpop.f32.mrf.mxu2 }
 0x223   : > { %v2079_v51 = vadd.f32 %v2062_v28, %v1937_v6 }
 0x225   : > { %v2255_v14 = vpop.f32.mrf.mxu0 }
 0x226   : > { %v4142_v56 = vpop.f32.mrf.mxu3 }
 0x22a   : > { %v2064_v17 = vpop.f32.mrf.mxu2 }
 0x22b   : > { %v2080_v61 = vadd.f32 %v2064_v17, %v1938_v24 }
 0x22d   : > { %v2258_v30 = vpop.f32.mrf.mxu0 }
 0x22e   : > { %v2114_v44 = vpop.f32.mrf.mxu3 }
 0x22f   : > { %v2134_v23 = vadd.f32 %v2114_v44, %v2077_v52 }
 0x231   : > { %v2268_v49 = vadd.f32 %v2248_v58, %v2134_v23  ;;  %v1930_v23 = vpop.f32.mrf.mxu1 }
 0x232   : > { %v2067_v38 = vpop.f32.mrf.mxu2 }
 0x233   : > { %v2280_v59 = vmul.f32 %v4148_v21, %v2268_v49  ;;  %v2081_v1 = vadd.f32 %v2067_v38, %v1939_v5  ;;  %v3003_v38 = vld [vmem:[%s4258_s8] ss:$0 sm:$0xff] }
 0x235   : > { %v2292_v31 = vadd.f32 %v4155_v42, %v2280_v59  ;;  %v2260_v32 = vpop.f32.mrf.mxu0 }
 0x236   : > { %v2116_v34 = vpop.f32.mrf.mxu3 }
 0x237   : > { %v2135_v35 = vadd.f32 %v2116_v34, %v2078_v2  ;;  %v2300_v46 = vmax.f32 %v2292_v31, 0.0  ;;  %v1609_v34 = vadd.f32 %v4136_v22, %v4123_v25 }
 0x239   : > { %v2269_v26 = vadd.f32 %v2250_v41, %v2135_v35  ;;  %v1806_v41 = vadd.f32 %v4132_v3, %v1749_v57  ;;  %v1751_v40 = vadd.f32 %v4142_v56, %v1609_v34  ;;  %v1932_v25 = vpop.f32.mrf.mxu1 }
 0x23a   : > { %v2069_v9 = vpop.f32.mrf.mxu2 }
 0x23b   : > { %v2281_v13 = vmul.f32 %v4148_v21, %v2269_v26  ;;  %v1940_v44 = vadd.f32 %v1927_v36, %v1806_v41  ;;  %v1808_v6 = vadd.f32 %v4138_v15, %v1751_v40 }
 0x23d   : > { %v2293_v10 = vadd.f32 %v4155_v42, %v2281_v13  ;;  %v2082_v63 = vadd.f32 %v2069_v9, %v1940_v44  ;;  %v2263_v26 = vpop.f32.mrf.mxu0 }
 0x23e   : > { %v2119_v47 = vpop.f32.mrf.mxu3 }
 0x23f   : > { %v2301_v50 = vmax.f32 %v2293_v10, 0.0  ;;  %v2136_v20 = vadd.f32 %v2119_v47, %v2079_v51 }
 0x241   : > { %v2308_v18 = vpack.c.bf16 %v2301_v50, %v2300_v46  ;;  %v2270_v29 = vadd.f32 %v2253_v43, %v2136_v20  ;;  %v1941_v43 = vadd.f32 %v1930_v23, %v4140_v54  ;;  %v1942_v54 = vadd.f32 %v1932_v25, %v1808_v6 }
 0x242   : > { %v2072_v2 = vpop.f32.mrf.mxu2 }
 0x243   : > { %2780 = vmatmul.msk.bf16.vlgmr.msra.gmra.mxu1 %vm4392_vm0, %v2308_v18  ;;  %v2282_v48 = vmul.f32 %v4148_v21, %v2270_v29  ;;  %v2083_v4 = vadd.f32 %v2072_v2, %v1941_v43  ;;  %v2879_v2 = vld [vmem:[%s4191_s25 + $0x10] sm:$0xff]  }
 0x245   : > { %v2294_v55 = vadd.f32 %v4155_v42, %v2282_v48  ;;  %v2265_v50 = vpop.f32.mrf.mxu0 }
 0x246   : > { %v2121_v39 = vpop.f32.mrf.mxu3 }
 0x247   : > { %v2137_v62 = vadd.f32 %v2121_v39, %v2080_v61  ;;  %v2302_v12 = vmax.f32 %v2294_v55, 0.0  ;;  %v2843_v39 = vld [vmem:[%s4191_s25] sm:$0xff]  }
 0x249   : > { %v2271_v45 = vadd.f32 %v2255_v14, %v2137_v62  ;;  %v2844_v62 = vunpack.c.l.bf16 %v2843_v39 }
 0x24a   : > { %v2074_v51 = vpop.f32.mrf.mxu2 }
 0x24b   : > { %v2283_v58 = vmul.f32 %v4148_v21, %v2271_v45  ;;  %v2084_v10 = vadd.f32 %v2074_v51, %v1942_v54 }
 0x24d   : > { %v2295_v33 = vadd.f32 %v4155_v42, %v2283_v58 }
 0x24e   : > { %v2124_v11 = vpop.f32.mrf.mxu3 }
 0x24f   : > { %v2138_v52 = vadd.f32 %v2124_v11, %v2081_v1  ;;  %v2303_v0 = vmax.f32 %v2295_v33, 0.0  ;;  %v2878_v11 = vld [vmem:[%s4191_s25 + $0x8] sm:$0xff]  }
 0x251   : > { %v2309_v16 = vpack.c.bf16 %v2303_v0, %v2302_v12  ;;  %v2272_v27 = vadd.f32 %v2258_v30, %v2138_v52  ;;  %v2845_v30 = vunpack.c.h.bf16 %v2843_v39  ;;  %v2848_v52 = vunpack.c.l.bf16 %v2878_v11 }
 0x253   : > { %2781 = vmatmul.msk.bf16.gmra.mxu1 %vm4393_vm2, %v2309_v16  ;;  %v2284_v53 = vmul.f32 %v4148_v21, %v2272_v27  ;;  %v2849_v16 = vunpack.c.h.bf16 %v2878_v11 }
 0x255   : > { %v2296_v35 = vadd.f32 %v4155_v42, %v2284_v53 }
 0x256   : > { %v2126_v28 = vpop.f32.mrf.mxu3 }
 0x257   : > { %v2139_v49 = vadd.f32 %v2126_v28, %v2082_v63  ;;  %v2304_v31 = vmax.f32 %v2296_v35, 0.0 }
 0x259   : > { %v2273_v3 = vadd.f32 %v2260_v32, %v2139_v49 }
 0x25b   : > { %v2285_v59 = vmul.f32 %v4148_v21, %v2273_v3  ;;  %v2852_v3 = vunpack.c.l.bf16 %v2879_v2 }
 0x25d   : > { %v2297_v60 = vadd.f32 %v4155_v42, %v2285_v59  ;;  %v2853_v59 = vunpack.c.h.bf16 %v2879_v2 }
 0x25e   : > { %v2129_v17 = vpop.f32.mrf.mxu3 }
 0x25f   : > { %v2140_v7 = vadd.f32 %v2129_v17, %v2083_v4  ;;  %v2305_v13 = vmax.f32 %v2297_v60, 0.0 }
 0x261   : > { %v2310_v22 = vpack.c.bf16 %v2305_v13, %v2304_v31  ;;  %v2274_v56 = vadd.f32 %v2263_v26, %v2140_v7  ;;  %v2880_v13 = vld [vmem:[%s4191_s25 + $0x18] sm:$0xff]   ;;  %s4396_s25 = sand.u32 1, %s3109_s14  }
 0x262   : > { %s2446_s2 = scalar_lea.sflag [#allocation5], %s4396_s25 }
 0x263   : > { %2782 = vmatmul.msk.bf16.gmra.mxu1 %vm4394_vm9, %v2310_v22  ;;  %v2286_v8 = vmul.f32 %v4148_v21, %v2274_v56  ;;  %v2856_v22 = vunpack.c.l.bf16 %v2880_v13  ;;  %v2857_v56 = vunpack.c.h.bf16 %v2880_v13 }
 0x265   : > { %v2298_v14 = vadd.f32 %v4155_v42, %v2286_v8 }
 0x266   : > { %v2131_v47 = vpop.f32.mrf.mxu3 }
 0x267   : > { %v2141_v46 = vadd.f32 %v2131_v47, %v2084_v10  ;;  %v2306_v19 = vmax.f32 %v2298_v14, 0.0 }
 0x269   : > { %v2275_v20 = vadd.f32 %v2265_v50, %v2141_v46 }
 0x26b   : > { %v2287_v15 = vmul.f32 %v4148_v21, %v2275_v20 }
 0x26d   : > { %v2299_v18 = vadd.f32 %v4155_v42, %v2287_v15  ;;  %v3004_v42 = vld [vmem:[%s4259_s9] ss:$0 sm:$0xff] }
 0x26f   : > { %v2307_v24 = vmax.f32 %v2299_v18, 0.0 }
 0x271   : > { %v2311_v29 = vpack.c.bf16 %v2307_v24, %v2306_v19 }
 0x273   : > { %2783 = vmatmul.msk.bf16.gmra.mxu1 %vm4395_vm1, %v2311_v29 }
 0x2c0   : > { %v2349_v61 = vpop.f32.mrf.mxu1 }
 0x2c1   : > { %v2373_v21 = vmul.f32 %v3003_v38, %v2349_v61 }
 0x2c3   : > { %v2385_v48 = vadd.f32 %v3004_v42, %v2373_v21 }
 0x2c5   : > { %v2413_v5 = vadd.f32 %v2844_v62, %v2385_v48 }
 0x2c7   : > { %v2421_v55 = vmax.f32 %v2413_v5, 0.0 }
 0x2c8   : > { %v2351_v37 = vpop.f32.mrf.mxu1 }
 0x2c9   : > { %v2374_v45 = vmul.f32 %v3003_v38, %v2351_v37 }
 0x2cb   : > { %v2386_v57 = vadd.f32 %v3004_v42, %v2374_v45 }
 0x2cd   : > { %v2414_v58 = vadd.f32 %v2845_v30, %v2386_v57 }
 0x2cf   : > { %v2422_v36 = vmax.f32 %v2414_v58, 0.0 }
 0x2d0   : > { %v2354_v1 = vpop.f32.mrf.mxu1 }
 0x2d1   : > { %v2861_v33 = vpack.c.bf16 %v2422_v36, %v2421_v55  ;;  %v2375_v9 = vmul.f32 %v3003_v38, %v2354_v1 }
 0x2d3   : > { %2862 = vst [vmem:[%s3280_s12] sm:$0xff] %v2861_v33   ;;  %v2387_v41 = vadd.f32 %v3004_v42, %v2375_v9 }
 0x2d5   : > { %v2415_v44 = vadd.f32 %v2848_v52, %v2387_v41 }
 0x2d7   : > { %v2423_v63 = vmax.f32 %v2415_v44, 0.0 }
 0x2d8   : > { %v2356_v12 = vpop.f32.mrf.mxu1 }
 0x2d9   : > { %v2376_v0 = vmul.f32 %v3003_v38, %v2356_v12 }
 0x2db   : > { %v2388_v27 = vadd.f32 %v3004_v42, %v2376_v0 }
 0x2dd   : > { %v2416_v32 = vadd.f32 %v2849_v16, %v2388_v27 }
 0x2df   : > { %v2424_v23 = vmax.f32 %v2416_v32, 0.0 }
 0x2e0   : > { %v2359_v28 = vpop.f32.mrf.mxu1 }
 0x2e1   : > { %v2866_v53 = vpack.c.bf16 %v2424_v23, %v2423_v63  ;;  %v2377_v49 = vmul.f32 %v3003_v38, %v2359_v28 }
 0x2e3   : > { %2881 = vst [vmem:[%s3280_s12 + $0x8] sm:$0xff] %v2866_v53   ;;  %v2389_v34 = vadd.f32 %v3004_v42, %v2377_v49 }
 0x2e5   : > { %v2417_v35 = vadd.f32 %v2852_v3, %v2389_v34 }
 0x2e7   : > { %v2425_v26 = vmax.f32 %v2417_v35, 0.0 }
 0x2e8   : > { %v2361_v43 = vpop.f32.mrf.mxu1 }
 0x2e9   : > { %v2378_v40 = vmul.f32 %v3003_v38, %v2361_v43 }
 0x2eb   : > { %v2390_v4 = vadd.f32 %v3004_v42, %v2378_v40 }
 0x2ed   : > { %v2418_v60 = vadd.f32 %v2853_v59, %v2390_v4 }
 0x2ef   : > { %v2426_v17 = vmax.f32 %v2418_v60, 0.0 }
 0x2f0   : > { %v2364_v6 = vpop.f32.mrf.mxu1 }
 0x2f1   : > { %v2871_v7 = vpack.c.bf16 %v2426_v17, %v2425_v26  ;;  %v2379_v31 = vmul.f32 %v3003_v38, %v2364_v6 }
 0x2f3   : > { %2882 = vst [vmem:[%s3280_s12 + $0x10] sm:$0xff] %v2871_v7   ;;  %v2391_v25 = vadd.f32 %v3004_v42, %v2379_v31 }
 0x2f5   : > { %v2419_v10 = vadd.f32 %v2856_v22, %v2391_v25 }
 0x2f7   : > { %v2427_v46 = vmax.f32 %v2419_v10, 0.0 }
 0x2f8   : > { %v2366_v51 = vpop.f32.mrf.mxu1 }
 0x2f9   : > { %v2380_v54 = vmul.f32 %v3003_v38, %v2366_v51 }
 0x2fb   : > { %v2392_v47 = vadd.f32 %v3004_v42, %v2380_v54 }
 0x2fd   : > { %v2420_v8 = vadd.f32 %v2857_v56, %v2392_v47 }
 0x2ff   : > { %v2428_v50 = vmax.f32 %v2420_v8, 0.0 }
 0x301   : > { %v2876_v20 = vpack.c.bf16 %v2428_v50, %v2427_v46 }
 0x303   : > { %2883 = vst [vmem:[%s3280_s12 + $0x18] sm:$0xff] %v2876_v20  }
 0x304   : > { %3062 = shalt.err (!%p3059_p11)
}
 0x305   : > { %s3139_s12 = smov 64   ;;  %s3140_s26 = smov 4  }
 0x306   : > { %2916 = dma.vmem_to_hbm [thread:$0]  (%p3248_p3), %s2462_s16, 512, %s2464_s17, %s2446_s2, %s3139_s12, %s3139_s12, %s3140_s26  }
 0x307 PF: > { %s4397_s25 = sld [smem:[#allocation9_spill]]  ;;  %p2928_p12 = scmp.ge.s32.totalorder %s3133_s20, 2 }
 0x309   : > { %p2923_p13 = pnand %p2928_p12, %p3257_p8 }
 0x30b   : > { %p2924_p0 = pneg %p2923_p13 }
 0x30d   : > { %s2478_s11 = sand.u32 1, %s4397_s25  }
 0x30e   : > { %s2479_s23 = scalar_lea.sflag [#allocation5], %s2478_s11 }
 0x30f   : > { %3100 = dma.done.wait (%p2924_p0), %s2479_s23, 512  }
 0x310   : > { %3102 = vsyncadd (%p2924_p0), %s2479_s23, 4294966784  ;;  %s24_s20 = sadd.s32 1, %s3133_s20   ;;  %s4398_s16 = sld [smem:[#allocation10_spill]] }
 0x311   : > { %p21_p1 = scmp.ge.s32.totalorder %s24_s20, 10   ;;  %s4399_s18 = sld [smem:[#allocation11_spill]] }
 0x312   : > { %s4400_s13 = smov %s3109_s14  ;;  %s4401_s14 = smov %s3113_s15 }
 0x313   : > { %s4402_s15 = smov %s3268_s22  ;;  %s4403_s17 = smov %s3129_s19 }
 0x314   : > { %s4404_s19 = smov %s4410_s24  ;;  %23 = sbr.rel (!%p21_p1) target bundleno = 8 (0x8), region = 106 }
 0x319   :  { %2485 = vsyncpa [#allocation4], 1 }
 0x31a   :  { %2487 = vsyncpa [#allocation4 + $0x1], 1 }
 0x31b   :  { %2488 = vsyncpa [#allocation5], 1 }
 0x31c   :  { %2490 = vsyncpa [#allocation5 + $0x1], 1 }

</bundles_post_ra>
